<compile_context>
chip_gen: v7x
topology: tpu7x:2x2x1
jax: 0.10.0
libtpu: 0.0.40
codegen_flags: <defaults>
</compile_context>

<pallas_src>
import functools

import jax
import jax.numpy as jnp
from jax import lax
from jax.experimental import pallas as pl
from jax.experimental.pallas import tpu as pltpu


# ----------------------------------------------------------------------------
# In-kernel helpers
# ----------------------------------------------------------------------------

def _erf(x):
    # Abramowitz & Stegun 7.1.26 polynomial, |err| < 1.5e-7.  Keeps exact-GELU
    # semantics without relying on a dedicated erf lowering inside Mosaic.
    a1, a2, a3, a4, a5 = 0.254829592, -0.284496736, 1.421413741, -1.453152027, 1.061405429
    p = 0.3275911
    sgn = jnp.where(x >= 0.0, 1.0, -1.0)
    ax = jnp.abs(x)
    t = 1.0 / (1.0 + p * ax)
    poly = ((((a5 * t + a4) * t + a3) * t + a2) * t + a1) * t
    return sgn * (1.0 - poly * jnp.exp(-ax * ax))


def _layernorm(z, g, b):
    mean = jnp.mean(z, axis=-1, keepdims=True)
    var = jnp.mean((z - mean) ** 2, axis=-1, keepdims=True)
    return (z - mean) * lax.rsqrt(var + 1e-5) * g + b


# ----------------------------------------------------------------------------
# The fused whole-model Pallas kernel (grid axis = layer)
# ----------------------------------------------------------------------------

def _gpt_stack_kernel(x0_ref, pswap_ref, cos_ref, sin_ref, bias_ref,
                      ln1g_ref, ln1b_ref, wqkv_ref, wo_ref, bo_ref,
                      ln2g_ref, ln2b_ref, w1_ref, b1_ref, w2_ref, b2_ref,
                      lmw_ref, lmb_ref,
                      logits_ref, x_scr, att_scr, *, n_heads):
    f32, bf16 = jnp.float32, jnp.bfloat16
    layer = pl.program_id(0)

    # Seed the VMEM-resident activation carry with the token embeddings.
    @pl.when(layer == 0)
    def _():
        x_scr[...] = x0_ref[...]

    x = x_scr[...]                               # (M, C) f32, M = B*T
    M, C = x.shape
    hs = C // n_heads

    # ---------------- self-attention sub-block ----------------
    h = _layernorm(x, ln1g_ref[0], ln1b_ref[0])
    qkv = jnp.dot(h.astype(bf16), wqkv_ref[0], preferred_element_type=f32)   # (M, 3C)

    # RoPE: pair swap via a precomputed bf16 permutation (single MXU pass);
    # hoisted cos/sin cover q|k|v lanes (v region = identity) and the q region
    # already carries the n_emb**-0.5 attention scale.
    qkv_sw = jnp.dot(qkv.astype(bf16), pswap_ref[...], preferred_element_type=f32)
    qkv = (qkv * cos_ref[...] + qkv_sw * sin_ref[...]).astype(bf16)

    bias = bias_ref[...]                         # (M, M) block-diag causal bias
    for hd in range(n_heads):                    # static unroll, H is small
        q_h = qkv[:, hd * hs:(hd + 1) * hs]
        k_h = qkv[:, C + hd * hs:C + (hd + 1) * hs]
        v_h = qkv[:, 2 * C + hd * hs:2 * C + (hd + 1) * hs]
        s = lax.dot_general(q_h, k_h,
                            dimension_numbers=(((1,), (1,)), ((), ())),
                            preferred_element_type=f32) + bias          # (M, M)
        s = s - jnp.max(s, axis=-1, keepdims=True)
        p = jnp.exp(s)
        p = p * pl.reciprocal(jnp.sum(p, axis=-1, keepdims=True), approx=True)
        att_scr[:, hd * hs:(hd + 1) * hs] = jnp.dot(
            p.astype(bf16), v_h, preferred_element_type=f32)             # (M, hs)

    # Single K=C output projection over the concatenated heads + bias + residual.
    att = att_scr[...]
    x = x + jnp.dot(att.astype(bf16), wo_ref[0], preferred_element_type=f32) + bo_ref[0]

    # ---------------- feed-forward sub-block ----------------
    h2 = _layernorm(x, ln2g_ref[0], ln2b_ref[0])
    hh = jnp.dot(h2.astype(bf16), w1_ref[0], preferred_element_type=f32) + b1_ref[0]
    hh = 0.5 * hh * (1.0 + _erf(hh * 0.7071067811865476))               # exact (erf) GELU
    ff = jnp.dot(hh.astype(bf16), w2_ref[0], preferred_element_type=f32) + b2_ref[0]
    x = x + ff
    x_scr[...] = x                               # carry to the next layer (VMEM only)

    # ---------------- fused lm_head on the final layer ----------------
    @pl.when(layer == pl.num_programs(0) - 1)
    def _():
        logits_ref[...] = (jnp.dot(x.astype(bf16), lmw_ref[...],
                                   preferred_element_type=f32) + lmb_ref[...])


# ----------------------------------------------------------------------------
# Pallas wrapper: one pallas_call for the whole stack (+ lm_head)
# ----------------------------------------------------------------------------

def nanogpt_stack(x0, pswap, cos3, sin3, bias, params, cfg):
    M, C = x0.shape
    L, H = cfg["n_layer"], cfg["n_heads"]
    Ch = 4 * C
    Vp = params["lm_w"].shape[1]

    # Layer-invariant residents (fetched once; constant block index across the grid).
    # NOTE: pl.Buffered(1) on these would halve their VMEM footprint at real
    # nanoGPT sizes; irrelevant at C=32 so left at the default.
    def const(shape):
        return pl.BlockSpec(shape, lambda l: (0,) * len(shape))

    # Per-layer stacked tensors, indexed (and pipeline-prefetched) by the layer id.
    def per_layer(*shape):
        return pl.BlockSpec((1,) + shape, lambda l: (l,) + (0,) * len(shape))

    return pl.pallas_call(
        functools.partial(_gpt_stack_kernel, n_heads=H),
        grid=(L,),
        in_specs=[
            const((M, C)),                        # x0 (token embeddings, B folded into M)
            const((3 * C, 3 * C)),                # RoPE pair-swap permutation (bf16)
            const((M, 3 * C)),                    # RoPE cos (q-scaled | k | identity-v)
            const((M, 3 * C)),                    # RoPE sin (alt sign, zero for v)
            const((M, M)),                        # block-diagonal causal additive bias
            per_layer(1, C), per_layer(1, C),     # ln1 gamma / beta
            per_layer(C, 3 * C),                  # fused Wqkv
            per_layer(C, C), per_layer(1, C),     # Wo, bo
            per_layer(1, C), per_layer(1, C),     # ln2 gamma / beta
            per_layer(C, Ch), per_layer(1, Ch),   # W1, b1
            per_layer(Ch, C), per_layer(1, C),    # W2, b2
            const((C, Vp)), const((1, Vp)),       # lm_head weight / bias (lane-dense)
        ],
        out_specs=pl.BlockSpec((M, Vp), lambda l: (0, 0)),   # lane-dense logits slab
        out_shape=jax.ShapeDtypeStruct((M, Vp), jnp.float32),
        scratch_shapes=[pltpu.VMEM((M, C), jnp.float32),     # activation carry
                        pltpu.VMEM((M, C), jnp.float32)],    # per-head attention outputs
        compiler_params=pltpu.CompilerParams(
            dimension_semantics=("arbitrary",)),  # layers are sequential
        # TODO(synk): on v7x, add a leading size-2 "parallel" batch-split grid
        # axis (per-core activation carry) to occupy the second TensorCore.
    )(x0, pswap, cos3, sin3, bias,
      params["ln1_g"], params["ln1_b"], params["wqkv"],
      params["wo"], params["bo"],
      params["ln2_g"], params["ln2_b"],
      params["w1"], params["b1"], params["w2"], params["b2"],
      params["lm_w"], params["lm_b"])


# ----------------------------------------------------------------------------
# Model glue (plain JAX): RoPE / mask tables, params, forward
# ----------------------------------------------------------------------------

def build_tables(B, T, C, H, scale, base=10000.0):
    # RotaryPositionEmbeddings quirk kept: theta uses the FULL embedding dim in
    # the exponent, then is truncated to head_size // 2 entries.
    hs = C // H
    j = jnp.arange(C // 2, dtype=jnp.float32)
    theta = jnp.power(base, -2.0 * j / C)[: hs // 2]
    pos = jnp.arange(T, dtype=jnp.float32)
    ang = pos[:, None] * theta[None, :]                       # (T, hs//2)
    cos_h = jnp.repeat(jnp.cos(ang), 2, axis=1)               # (T, hs)
    s = jnp.sin(ang)
    sin_h = jnp.stack([-s, s], axis=-1).reshape(T, hs)        # signs -,+,-,+
    cos_c = jnp.tile(cos_h, (1, H))                           # (T, C) same cache per head
    sin_c = jnp.tile(sin_h, (1, H))
    ones = jnp.ones((T, C), jnp.float32)
    zeros = jnp.zeros((T, C), jnp.float32)
    # Tables span the fused q|k|v lanes; q region carries the attention scale,
    # v region is the identity rotation.  Rows are tiled over batch (M = B*T).
    cos3 = jnp.tile(jnp.concatenate([cos_c * scale, cos_c, ones], axis=1), (B, 1))
    sin3 = jnp.tile(jnp.concatenate([sin_c * scale, sin_c, zeros], axis=1), (B, 1))
    # Pair-swap permutation (lane 2m <-> 2m+1) as a bf16 constant for the MXU.
    i = jnp.arange(3 * C)
    partner = i + 1 - 2 * (i % 2)
    pswap = (i[:, None] == partner[None, :]).astype(jnp.bfloat16)
    # Block-diagonal causal additive bias over the B*T folded rows.
    r = jnp.arange(B * T)
    same_b = (r[:, None] // T) == (r[None, :] // T)
    causal = (r[None, :] % T) <= (r[:, None] % T)
    bias = jnp.where(same_b & causal, 0.0, -1e30).astype(jnp.float32)
    return pswap, cos3, sin3, bias


def init_params(key, cfg):
    C, V, L = cfg["n_emb"], cfg["vocab_size"], cfg["n_layer"]
    Vp = ((V + 127) // 128) * 128                 # lane-dense lm_head padding

    def nrm(k, shape, scale=0.02):
        return scale * jax.random.normal(k, shape, dtype=jnp.float32)

    keys = jax.random.split(key, 4)
    kq, kk, kv, ko, k1, k2 = jax.random.split(keys[3], 6)
    wq, wk, wv = nrm(kq, (L, C, C)), nrm(kk, (L, C, C)), nrm(kv, (L, C, C))
    return {
        "tok_emb": nrm(keys[0], (V, C), 1.0),
        "pos_emb": nrm(keys[1], (cfg["block_size"], C), 1.0),  # unused (faithful to forward)
        "lm_w": jnp.pad(nrm(keys[2], (C, V)), ((0, 0), (0, Vp - V))).astype(jnp.bfloat16),
        "lm_b": jnp.zeros((1, Vp), jnp.float32),
        "ln1_g": jnp.ones((L, 1, C), jnp.float32),
        "ln1_b": jnp.zeros((L, 1, C), jnp.float32),
        "wqkv": jnp.concatenate([wq, wk, wv], axis=2).astype(jnp.bfloat16),
        "wo": nrm(ko, (L, C, C)).astype(jnp.bfloat16),
        "bo": jnp.zeros((L, 1, C), jnp.float32),
        "ln2_g": jnp.ones((L, 1, C), jnp.float32),
        "ln2_b": jnp.zeros((L, 1, C), jnp.float32),
        "w1": nrm(k1, (L, C, 4 * C)).astype(jnp.bfloat16),
        "b1": jnp.zeros((L, 1, 4 * C), jnp.float32),
        "w2": nrm(k2, (L, 4 * C, C)).astype(jnp.bfloat16),
        "b2": jnp.zeros((L, 1, C), jnp.float32),
    }


def nanogpt_forward(idx, params, cfg):
    B, T = idx.shape
    C, H, V = cfg["n_emb"], cfg["n_heads"], cfg["vocab_size"]
    Vp = params["lm_w"].shape[1]
    scale = C ** -0.5                             # quirk kept: n_emb**-0.5, not hs**-0.5

    x = params["tok_emb"][idx].reshape(B * T, C)  # token-embedding gather (glue); fold B->M
    pswap, cos3, sin3, bias = build_tables(B, T, C, H, scale)

    logits = nanogpt_stack(x, pswap, cos3, sin3, bias, params, cfg)
    logits = logits.reshape(B, T, Vp)[:, :, :V]   # strip lane padding
    return logits, None                           # (logits, loss) with targets=None


# ----------------------------------------------------------------------------
# Main
# ----------------------------------------------------------------------------

if __name__ == "__main__":
    cfg = dict(
        vocab_size=65,   # typical Shakespeare char vocab
        n_emb=32,
        n_heads=4,
        block_size=16,
        n_layer=2,
        dropout=0.0,     # dropout == identity (eval semantics)
    )

    key = jax.random.PRNGKey(0)
    pkey, ikey = jax.random.split(key)
    params = init_params(pkey, cfg)

    B, T = 2, 8
    idx = jax.random.randint(ikey, (B, T), 0, cfg["vocab_size"], dtype=jnp.int32)

    fwd = jax.jit(lambda idx, params: nanogpt_forward(idx, params, cfg)[0])
    logits = fwd(idx, params)
    jax.block_until_ready(logits)

    assert logits.shape == (B, T, cfg["vocab_size"])
    assert bool(jnp.all(jnp.isfinite(logits)))
    print("KERNEL_OK")
</pallas_src>

<mosaic_0001>
module attributes {stable_mosaic.version = 11 : i64} {
  func.func @_gpt_stack_kernel(%arg0: i32, %arg1: memref<16x32xf32, #tpu.memory_space<vmem>>, %arg2: memref<96x96xbf16, #tpu.memory_space<vmem>>, %arg3: memref<16x96xf32, #tpu.memory_space<vmem>>, %arg4: memref<16x96xf32, #tpu.memory_space<vmem>>, %arg5: memref<16x16xf32, #tpu.memory_space<vmem>>, %arg6: memref<1x1x32xf32, #tpu.memory_space<vmem>>, %arg7: memref<1x1x32xf32, #tpu.memory_space<vmem>>, %arg8: memref<1x32x96xbf16, #tpu.memory_space<vmem>>, %arg9: memref<1x32x32xbf16, #tpu.memory_space<vmem>>, %arg10: memref<1x1x32xf32, #tpu.memory_space<vmem>>, %arg11: memref<1x1x32xf32, #tpu.memory_space<vmem>>, %arg12: memref<1x1x32xf32, #tpu.memory_space<vmem>>, %arg13: memref<1x32x128xbf16, #tpu.memory_space<vmem>>, %arg14: memref<1x1x128xf32, #tpu.memory_space<vmem>>, %arg15: memref<1x128x32xbf16, #tpu.memory_space<vmem>>, %arg16: memref<1x1x32xf32, #tpu.memory_space<vmem>>, %arg17: memref<32x128xbf16, #tpu.memory_space<vmem>>, %arg18: memref<1x128xf32, #tpu.memory_space<vmem>>, %arg19: memref<16x128xf32, #tpu.memory_space<vmem>>, %arg20: memref<16x32xf32, #tpu.memory_space<vmem>>, %arg21: memref<16x32xf32, #tpu.memory_space<vmem>>) attributes {dimension_semantics = [#tpu.dimension_semantics<arbitrary>], iteration_bounds = array<i64: 2>, scalar_prefetch = 0 : i64, scratch_operands = 2 : i64, tpu.core_type = #tpu.core_type<tc>, window_params = [{pipeline_mode = #tpu.pipeline_mode<synchronous>, transform_indices = @transform_0, window_bounds = array<i64: 16, 32>}, {pipeline_mode = #tpu.pipeline_mode<synchronous>, transform_indices = @transform_1, window_bounds = array<i64: 96, 96>}, {pipeline_mode = #tpu.pipeline_mode<synchronous>, transform_indices = @transform_2, window_bounds = array<i64: 16, 96>}, {pipeline_mode = #tpu.pipeline_mode<synchronous>, transform_indices = @transform_3, window_bounds = array<i64: 16, 96>}, {pipeline_mode = #tpu.pipeline_mode<synchronous>, transform_indices = @transform_4, window_bounds = array<i64: 16, 16>}, {transform_indices = @transform_5, window_bounds = array<i64: 1, 1, 32>}, {transform_indices = @transform_6, window_bounds = array<i64: 1, 1, 32>}, {transform_indices = @transform_7, window_bounds = array<i64: 1, 32, 96>}, {transform_indices = @transform_8, window_bounds = array<i64: 1, 32, 32>}, {transform_indices = @transform_9, window_bounds = array<i64: 1, 1, 32>}, {transform_indices = @transform_10, window_bounds = array<i64: 1, 1, 32>}, {transform_indices = @transform_11, window_bounds = array<i64: 1, 1, 32>}, {transform_indices = @transform_12, window_bounds = array<i64: 1, 32, 128>}, {transform_indices = @transform_13, window_bounds = array<i64: 1, 1, 128>}, {transform_indices = @transform_14, window_bounds = array<i64: 1, 128, 32>}, {transform_indices = @transform_15, window_bounds = array<i64: 1, 1, 32>}, {pipeline_mode = #tpu.pipeline_mode<synchronous>, transform_indices = @transform_16, window_bounds = array<i64: 32, 128>}, {pipeline_mode = #tpu.pipeline_mode<synchronous>, transform_indices = @transform_17, window_bounds = array<i64: 1, 128>}, {pipeline_mode = #tpu.pipeline_mode<synchronous>, transform_indices = @transform_18, window_bounds = array<i64: 16, 128>}]} {
    %c0_i32 = arith.constant 0 : i32
    %0 = arith.cmpi eq, %arg0, %c0_i32 : i32
    %1 = arith.extui %0 : i1 to i32
    %c0_i32_0 = arith.constant 0 : i32
    %2 = arith.cmpi ne, %1, %c0_i32_0 : i32
    scf.if %2 {
      %c0_99 = arith.constant 0 : index
      %c0_100 = arith.constant 0 : index
      %214 = vector.load %arg1[%c0_99, %c0_100] : memref<16x32xf32, #tpu.memory_space<vmem>>, vector<16x32xf32>
      %c0_101 = arith.constant 0 : index
      %c0_102 = arith.constant 0 : index
      %215 = vector.load %arg20[%c0_101, %c0_102] : memref<16x32xf32, #tpu.memory_space<vmem>>, vector<16x32xf32>
      tpu.vector_store %arg20[%c0_101, %c0_102], %214 {strides = array<i32>} : memref<16x32xf32, #tpu.memory_space<vmem>>, vector<16x32xf32>,
    } else {
    }
    %c0 = arith.constant 0 : index
    %c0_1 = arith.constant 0 : index
    %3 = vector.load %arg20[%c0, %c0_1] : memref<16x32xf32, #tpu.memory_space<vmem>>, vector<16x32xf32>
    %c0_2 = arith.constant 0 : index
    %c0_3 = arith.constant 0 : index
    %c0_4 = arith.constant 0 : index
    %4 = vector.load %arg6[%c0_2, %c0_3, %c0_4] : memref<1x1x32xf32, #tpu.memory_space<vmem>>, vector<1x1x32xf32>
    %5 = vector.shape_cast %4 : vector<1x1x32xf32> to vector<1x32xf32>
    %c0_5 = arith.constant 0 : index
    %c0_6 = arith.constant 0 : index
    %c0_7 = arith.constant 0 : index
    %6 = vector.load %arg7[%c0_5, %c0_6, %c0_7] : memref<1x1x32xf32, #tpu.memory_space<vmem>>, vector<1x1x32xf32>
    %7 = vector.shape_cast %6 : vector<1x1x32xf32> to vector<1x32xf32>
    %cst = arith.constant dense<0.000000e+00> : vector<16xf32>
    %8 = vector.multi_reduction <add>, %3, %cst [1] : vector<16x32xf32> to vector<16xf32>
    %9 = vector.shape_cast %8 : vector<16xf32> to vector<16x1xf32>
    %cst_8 = arith.constant 3.200000e+01 : f32
    %10 = vector.broadcast %cst_8 : f32 to vector<16x1xf32>
    %11 = arith.divf %9, %10 : vector<16x1xf32>
    %12 = vector.broadcast %11 : vector<16x1xf32> to vector<16x32xf32>
    %13 = arith.subf %3, %12 : vector<16x32xf32>
    %14 = arith.mulf %13, %13 : vector<16x32xf32>
    %cst_9 = arith.constant dense<0.000000e+00> : vector<16xf32>
    %15 = vector.multi_reduction <add>, %14, %cst_9 [1] : vector<16x32xf32> to vector<16xf32>
    %16 = vector.shape_cast %15 : vector<16xf32> to vector<16x1xf32>
    %cst_10 = arith.constant 3.200000e+01 : f32
    %17 = vector.broadcast %cst_10 : f32 to vector<16x1xf32>
    %18 = arith.divf %16, %17 : vector<16x1xf32>
    %19 = vector.broadcast %11 : vector<16x1xf32> to vector<16x32xf32>
    %20 = arith.subf %3, %19 : vector<16x32xf32>
    %cst_11 = arith.constant 9.99999974E-6 : f32
    %21 = vector.broadcast %cst_11 : f32 to vector<16x1xf32>
    %22 = arith.addf %18, %21 : vector<16x1xf32>
    %23 = math.rsqrt %22 : vector<16x1xf32>
    %24 = vector.broadcast %23 : vector<16x1xf32> to vector<16x32xf32>
    %25 = arith.mulf %20, %24 : vector<16x32xf32>
    %26 = vector.broadcast %5 : vector<1x32xf32> to vector<16x32xf32>
    %27 = arith.mulf %25, %26 : vector<16x32xf32>
    %28 = vector.broadcast %7 : vector<1x32xf32> to vector<16x32xf32>
    %29 = arith.addf %27, %28 : vector<16x32xf32>
    %30 = arith.truncf %29 : vector<16x32xf32> to vector<16x32xbf16>
    %c0_12 = arith.constant 0 : index
    %c0_13 = arith.constant 0 : index
    %c0_14 = arith.constant 0 : index
    %31 = vector.load %arg8[%c0_12, %c0_13, %c0_14] : memref<1x32x96xbf16, #tpu.memory_space<vmem>>, vector<1x32x96xbf16>
    %32 = vector.shape_cast %31 : vector<1x32x96xbf16> to vector<32x96xbf16>
    %cst_15 = arith.constant dense<0.000000e+00> : vector<16x96xf32>
    %33 = tpu.matmul %30, %32, %cst_15 {dimension_numbers = #tpu.dot_dimension_numbers<[1], [0], [0], [1], [0, 0, 1, 1], [], []>} : vector<16x32xbf16>, vector<32x96xbf16>, vector<16x96xf32> -> vector<16x96xf32>
    %34 = arith.truncf %33 : vector<16x96xf32> to vector<16x96xbf16>
    %c0_16 = arith.constant 0 : index
    %c0_17 = arith.constant 0 : index
    %35 = vector.load %arg2[%c0_16, %c0_17] : memref<96x96xbf16, #tpu.memory_space<vmem>>, vector<96x96xbf16>
    %cst_18 = arith.constant dense<0.000000e+00> : vector<16x96xf32>
    %36 = tpu.matmul %34, %35, %cst_18 {dimension_numbers = #tpu.dot_dimension_numbers<[1], [0], [0], [1], [0, 0, 1, 1], [], []>} : vector<16x96xbf16>, vector<96x96xbf16>, vector<16x96xf32> -> vector<16x96xf32>
    %c0_19 = arith.constant 0 : index
    %c0_20 = arith.constant 0 : index
    %37 = vector.load %arg3[%c0_19, %c0_20] : memref<16x96xf32, #tpu.memory_space<vmem>>, vector<16x96xf32>
    %38 = arith.mulf %33, %37 : vector<16x96xf32>
    %c0_21 = arith.constant 0 : index
    %c0_22 = arith.constant 0 : index
    %39 = vector.load %arg4[%c0_21, %c0_22] : memref<16x96xf32, #tpu.memory_space<vmem>>, vector<16x96xf32>
    %40 = arith.mulf %36, %39 : vector<16x96xf32>
    %41 = arith.addf %38, %40 : vector<16x96xf32>
    %42 = arith.truncf %41 : vector<16x96xf32> to vector<16x96xbf16>
    %c0_23 = arith.constant 0 : index
    %c0_24 = arith.constant 0 : index
    %43 = vector.load %arg5[%c0_23, %c0_24] : memref<16x16xf32, #tpu.memory_space<vmem>>, vector<16x16xf32>
    %44 = vector.extract_strided_slice %42 {offsets = [0, 0], sizes = [16, 8], strides = [1, 1]} : vector<16x96xbf16> to vector<16x8xbf16>
    %45 = vector.extract_strided_slice %42 {offsets = [0, 32], sizes = [16, 8], strides = [1, 1]} : vector<16x96xbf16> to vector<16x8xbf16>
    %46 = vector.extract_strided_slice %42 {offsets = [0, 64], sizes = [16, 8], strides = [1, 1]} : vector<16x96xbf16> to vector<16x8xbf16>
    %cst_25 = arith.constant dense<0.000000e+00> : vector<16x16xf32>
    %47 = tpu.matmul %44, %45, %cst_25 {dimension_numbers = #tpu.dot_dimension_numbers<[1], [1], [0], [0], [0, 0, 1, 0], [], []>} : vector<16x8xbf16>, vector<16x8xbf16>, vector<16x16xf32> -> vector<16x16xf32>
    %48 = arith.addf %47, %43 : vector<16x16xf32>
    %cst_26 = arith.constant dense<0xFF800000> : vector<16xf32>
    %49 = vector.multi_reduction <maximumf>, %48, %cst_26 [1] : vector<16x16xf32> to vector<16xf32>
    %50 = vector.shape_cast %49 : vector<16xf32> to vector<16x1xf32>
    %51 = vector.broadcast %50 : vector<16x1xf32> to vector<16x16xf32>
    %52 = arith.subf %48, %51 : vector<16x16xf32>
    %53 = math.exp %52 : vector<16x16xf32>
    %cst_27 = arith.constant dense<0.000000e+00> : vector<16xf32>
    %54 = vector.multi_reduction <add>, %53, %cst_27 [1] : vector<16x16xf32> to vector<16xf32>
    %55 = vector.shape_cast %54 : vector<16xf32> to vector<16x1xf32>
    %56 = tpu.reciprocal %55 {approx = true} : vector<16x1xf32> -> vector<16x1xf32>
    %57 = vector.broadcast %56 : vector<16x1xf32> to vector<16x16xf32>
    %58 = arith.mulf %53, %57 : vector<16x16xf32>
    %59 = arith.truncf %58 : vector<16x16xf32> to vector<16x16xbf16>
    %cst_28 = arith.constant dense<0.000000e+00> : vector<16x8xf32>
    %60 = tpu.matmul %59, %46, %cst_28 {dimension_numbers = #tpu.dot_dimension_numbers<[1], [0], [0], [1], [0, 0, 1, 1], [], []>} : vector<16x16xbf16>, vector<16x8xbf16>, vector<16x8xf32> -> vector<16x8xf32>
    %c0_29 = arith.constant 0 : index
    %c0_30 = arith.constant 0 : index
    %61 = vector.load %arg21[%c0_29, %c0_30] : memref<16x32xf32, #tpu.memory_space<vmem>>, vector<16x8xf32>
    tpu.vector_store %arg21[%c0_29, %c0_30], %60 {strides = array<i32>} : memref<16x32xf32, #tpu.memory_space<vmem>>, vector<16x8xf32>,
    %62 = vector.extract_strided_slice %42 {offsets = [0, 8], sizes = [16, 8], strides = [1, 1]} : vector<16x96xbf16> to vector<16x8xbf16>
    %63 = vector.extract_strided_slice %42 {offsets = [0, 40], sizes = [16, 8], strides = [1, 1]} : vector<16x96xbf16> to vector<16x8xbf16>
    %64 = vector.extract_strided_slice %42 {offsets = [0, 72], sizes = [16, 8], strides = [1, 1]} : vector<16x96xbf16> to vector<16x8xbf16>
    %cst_31 = arith.constant dense<0.000000e+00> : vector<16x16xf32>
    %65 = tpu.matmul %62, %63, %cst_31 {dimension_numbers = #tpu.dot_dimension_numbers<[1], [1], [0], [0], [0, 0, 1, 0], [], []>} : vector<16x8xbf16>, vector<16x8xbf16>, vector<16x16xf32> -> vector<16x16xf32>
    %66 = arith.addf %65, %43 : vector<16x16xf32>
    %cst_32 = arith.constant dense<0xFF800000> : vector<16xf32>
    %67 = vector.multi_reduction <maximumf>, %66, %cst_32 [1] : vector<16x16xf32> to vector<16xf32>
    %68 = vector.shape_cast %67 : vector<16xf32> to vector<16x1xf32>
    %69 = vector.broadcast %68 : vector<16x1xf32> to vector<16x16xf32>
    %70 = arith.subf %66, %69 : vector<16x16xf32>
    %71 = math.exp %70 : vector<16x16xf32>
    %cst_33 = arith.constant dense<0.000000e+00> : vector<16xf32>
    %72 = vector.multi_reduction <add>, %71, %cst_33 [1] : vector<16x16xf32> to vector<16xf32>
    %73 = vector.shape_cast %72 : vector<16xf32> to vector<16x1xf32>
    %74 = tpu.reciprocal %73 {approx = true} : vector<16x1xf32> -> vector<16x1xf32>
    %75 = vector.broadcast %74 : vector<16x1xf32> to vector<16x16xf32>
    %76 = arith.mulf %71, %75 : vector<16x16xf32>
    %77 = arith.truncf %76 : vector<16x16xf32> to vector<16x16xbf16>
    %cst_34 = arith.constant dense<0.000000e+00> : vector<16x8xf32>
    %78 = tpu.matmul %77, %64, %cst_34 {dimension_numbers = #tpu.dot_dimension_numbers<[1], [0], [0], [1], [0, 0, 1, 1], [], []>} : vector<16x16xbf16>, vector<16x8xbf16>, vector<16x8xf32> -> vector<16x8xf32>
    %c0_35 = arith.constant 0 : index
    %c8 = arith.constant 8 : index
    %79 = vector.load %arg21[%c0_35, %c8] : memref<16x32xf32, #tpu.memory_space<vmem>>, vector<16x8xf32>
    tpu.vector_store %arg21[%c0_35, %c8], %78 {strides = array<i32>} : memref<16x32xf32, #tpu.memory_space<vmem>>, vector<16x8xf32>,
    %80 = vector.extract_strided_slice %42 {offsets = [0, 16], sizes = [16, 8], strides = [1, 1]} : vector<16x96xbf16> to vector<16x8xbf16>
    %81 = vector.extract_strided_slice %42 {offsets = [0, 48], sizes = [16, 8], strides = [1, 1]} : vector<16x96xbf16> to vector<16x8xbf16>
    %82 = vector.extract_strided_slice %42 {offsets = [0, 80], sizes = [16, 8], strides = [1, 1]} : vector<16x96xbf16> to vector<16x8xbf16>
    %cst_36 = arith.constant dense<0.000000e+00> : vector<16x16xf32>
    %83 = tpu.matmul %80, %81, %cst_36 {dimension_numbers = #tpu.dot_dimension_numbers<[1], [1], [0], [0], [0, 0, 1, 0], [], []>} : vector<16x8xbf16>, vector<16x8xbf16>, vector<16x16xf32> -> vector<16x16xf32>
    %84 = arith.addf %83, %43 : vector<16x16xf32>
    %cst_37 = arith.constant dense<0xFF800000> : vector<16xf32>
    %85 = vector.multi_reduction <maximumf>, %84, %cst_37 [1] : vector<16x16xf32> to vector<16xf32>
    %86 = vector.shape_cast %85 : vector<16xf32> to vector<16x1xf32>
    %87 = vector.broadcast %86 : vector<16x1xf32> to vector<16x16xf32>
    %88 = arith.subf %84, %87 : vector<16x16xf32>
    %89 = math.exp %88 : vector<16x16xf32>
    %cst_38 = arith.constant dense<0.000000e+00> : vector<16xf32>
    %90 = vector.multi_reduction <add>, %89, %cst_38 [1] : vector<16x16xf32> to vector<16xf32>
    %91 = vector.shape_cast %90 : vector<16xf32> to vector<16x1xf32>
    %92 = tpu.reciprocal %91 {approx = true} : vector<16x1xf32> -> vector<16x1xf32>
    %93 = vector.broadcast %92 : vector<16x1xf32> to vector<16x16xf32>
    %94 = arith.mulf %89, %93 : vector<16x16xf32>
    %95 = arith.truncf %94 : vector<16x16xf32> to vector<16x16xbf16>
    %cst_39 = arith.constant dense<0.000000e+00> : vector<16x8xf32>
    %96 = tpu.matmul %95, %82, %cst_39 {dimension_numbers = #tpu.dot_dimension_numbers<[1], [0], [0], [1], [0, 0, 1, 1], [], []>} : vector<16x16xbf16>, vector<16x8xbf16>, vector<16x8xf32> -> vector<16x8xf32>
    %c0_40 = arith.constant 0 : index
    %c16 = arith.constant 16 : index
    %97 = vector.load %arg21[%c0_40, %c16] : memref<16x32xf32, #tpu.memory_space<vmem>>, vector<16x8xf32>
    tpu.vector_store %arg21[%c0_40, %c16], %96 {strides = array<i32>} : memref<16x32xf32, #tpu.memory_space<vmem>>, vector<16x8xf32>,
    %98 = vector.extract_strided_slice %42 {offsets = [0, 24], sizes = [16, 8], strides = [1, 1]} : vector<16x96xbf16> to vector<16x8xbf16>
    %99 = vector.extract_strided_slice %42 {offsets = [0, 56], sizes = [16, 8], strides = [1, 1]} : vector<16x96xbf16> to vector<16x8xbf16>
    %100 = vector.extract_strided_slice %42 {offsets = [0, 88], sizes = [16, 8], strides = [1, 1]} : vector<16x96xbf16> to vector<16x8xbf16>
    %cst_41 = arith.constant dense<0.000000e+00> : vector<16x16xf32>
    %101 = tpu.matmul %98, %99, %cst_41 {dimension_numbers = #tpu.dot_dimension_numbers<[1], [1], [0], [0], [0, 0, 1, 0], [], []>} : vector<16x8xbf16>, vector<16x8xbf16>, vector<16x16xf32> -> vector<16x16xf32>
    %102 = arith.addf %101, %43 : vector<16x16xf32>
    %cst_42 = arith.constant dense<0xFF800000> : vector<16xf32>
    %103 = vector.multi_reduction <maximumf>, %102, %cst_42 [1] : vector<16x16xf32> to vector<16xf32>
    %104 = vector.shape_cast %103 : vector<16xf32> to vector<16x1xf32>
    %105 = vector.broadcast %104 : vector<16x1xf32> to vector<16x16xf32>
    %106 = arith.subf %102, %105 : vector<16x16xf32>
    %107 = math.exp %106 : vector<16x16xf32>
    %cst_43 = arith.constant dense<0.000000e+00> : vector<16xf32>
    %108 = vector.multi_reduction <add>, %107, %cst_43 [1] : vector<16x16xf32> to vector<16xf32>
    %109 = vector.shape_cast %108 : vector<16xf32> to vector<16x1xf32>
    %110 = tpu.reciprocal %109 {approx = true} : vector<16x1xf32> -> vector<16x1xf32>
    %111 = vector.broadcast %110 : vector<16x1xf32> to vector<16x16xf32>
    %112 = arith.mulf %107, %111 : vector<16x16xf32>
    %113 = arith.truncf %112 : vector<16x16xf32> to vector<16x16xbf16>
    %cst_44 = arith.constant dense<0.000000e+00> : vector<16x8xf32>
    %114 = tpu.matmul %113, %100, %cst_44 {dimension_numbers = #tpu.dot_dimension_numbers<[1], [0], [0], [1], [0, 0, 1, 1], [], []>} : vector<16x16xbf16>, vector<16x8xbf16>, vector<16x8xf32> -> vector<16x8xf32>
    %c0_45 = arith.constant 0 : index
    %c24 = arith.constant 24 : index
    %115 = vector.load %arg21[%c0_45, %c24] : memref<16x32xf32, #tpu.memory_space<vmem>>, vector<16x8xf32>
    tpu.vector_store %arg21[%c0_45, %c24], %114 {strides = array<i32>} : memref<16x32xf32, #tpu.memory_space<vmem>>, vector<16x8xf32>,
    %c0_46 = arith.constant 0 : index
    %c0_47 = arith.constant 0 : index
    %116 = vector.load %arg21[%c0_46, %c0_47] : memref<16x32xf32, #tpu.memory_space<vmem>>, vector<16x32xf32>
    %117 = arith.truncf %116 : vector<16x32xf32> to vector<16x32xbf16>
    %c0_48 = arith.constant 0 : index
    %c0_49 = arith.constant 0 : index
    %c0_50 = arith.constant 0 : index
    %118 = vector.load %arg9[%c0_48, %c0_49, %c0_50] : memref<1x32x32xbf16, #tpu.memory_space<vmem>>, vector<1x32x32xbf16>
    %119 = vector.shape_cast %118 : vector<1x32x32xbf16> to vector<32x32xbf16>
    %cst_51 = arith.constant dense<0.000000e+00> : vector<16x32xf32>
    %120 = tpu.matmul %117, %119, %cst_51 {dimension_numbers = #tpu.dot_dimension_numbers<[1], [0], [0], [1], [0, 0, 1, 1], [], []>} : vector<16x32xbf16>, vector<32x32xbf16>, vector<16x32xf32> -> vector<16x32xf32>
    %121 = arith.addf %3, %120 : vector<16x32xf32>
    %c0_52 = arith.constant 0 : index
    %c0_53 = arith.constant 0 : index
    %c0_54 = arith.constant 0 : index
    %122 = vector.load %arg10[%c0_52, %c0_53, %c0_54] : memref<1x1x32xf32, #tpu.memory_space<vmem>>, vector<1x1x32xf32>
    %123 = vector.shape_cast %122 : vector<1x1x32xf32> to vector<1x32xf32>
    %124 = vector.broadcast %123 : vector<1x32xf32> to vector<16x32xf32>
    %125 = arith.addf %121, %124 : vector<16x32xf32>
    %c0_55 = arith.constant 0 : index
    %c0_56 = arith.constant 0 : index
    %c0_57 = arith.constant 0 : index
    %126 = vector.load %arg11[%c0_55, %c0_56, %c0_57] : memref<1x1x32xf32, #tpu.memory_space<vmem>>, vector<1x1x32xf32>
    %127 = vector.shape_cast %126 : vector<1x1x32xf32> to vector<1x32xf32>
    %c0_58 = arith.constant 0 : index
    %c0_59 = arith.constant 0 : index
    %c0_60 = arith.constant 0 : index
    %128 = vector.load %arg12[%c0_58, %c0_59, %c0_60] : memref<1x1x32xf32, #tpu.memory_space<vmem>>, vector<1x1x32xf32>
    %129 = vector.shape_cast %128 : vector<1x1x32xf32> to vector<1x32xf32>
    %cst_61 = arith.constant dense<0.000000e+00> : vector<16xf32>
    %130 = vector.multi_reduction <add>, %125, %cst_61 [1] : vector<16x32xf32> to vector<16xf32>
    %131 = vector.shape_cast %130 : vector<16xf32> to vector<16x1xf32>
    %cst_62 = arith.constant 3.200000e+01 : f32
    %132 = vector.broadcast %cst_62 : f32 to vector<16x1xf32>
    %133 = arith.divf %131, %132 : vector<16x1xf32>
    %134 = vector.broadcast %133 : vector<16x1xf32> to vector<16x32xf32>
    %135 = arith.subf %125, %134 : vector<16x32xf32>
    %136 = arith.mulf %135, %135 : vector<16x32xf32>
    %cst_63 = arith.constant dense<0.000000e+00> : vector<16xf32>
    %137 = vector.multi_reduction <add>, %136, %cst_63 [1] : vector<16x32xf32> to vector<16xf32>
    %138 = vector.shape_cast %137 : vector<16xf32> to vector<16x1xf32>
    %cst_64 = arith.constant 3.200000e+01 : f32
    %139 = vector.broadcast %cst_64 : f32 to vector<16x1xf32>
    %140 = arith.divf %138, %139 : vector<16x1xf32>
    %141 = vector.broadcast %133 : vector<16x1xf32> to vector<16x32xf32>
    %142 = arith.subf %125, %141 : vector<16x32xf32>
    %cst_65 = arith.constant 9.99999974E-6 : f32
    %143 = vector.broadcast %cst_65 : f32 to vector<16x1xf32>
    %144 = arith.addf %140, %143 : vector<16x1xf32>
    %145 = math.rsqrt %144 : vector<16x1xf32>
    %146 = vector.broadcast %145 : vector<16x1xf32> to vector<16x32xf32>
    %147 = arith.mulf %142, %146 : vector<16x32xf32>
    %148 = vector.broadcast %127 : vector<1x32xf32> to vector<16x32xf32>
    %149 = arith.mulf %147, %148 : vector<16x32xf32>
    %150 = vector.broadcast %129 : vector<1x32xf32> to vector<16x32xf32>
    %151 = arith.addf %149, %150 : vector<16x32xf32>
    %152 = arith.truncf %151 : vector<16x32xf32> to vector<16x32xbf16>
    %c0_66 = arith.constant 0 : index
    %c0_67 = arith.constant 0 : index
    %c0_68 = arith.constant 0 : index
    %153 = vector.load %arg13[%c0_66, %c0_67, %c0_68] : memref<1x32x128xbf16, #tpu.memory_space<vmem>>, vector<1x32x128xbf16>
    %154 = vector.shape_cast %153 : vector<1x32x128xbf16> to vector<32x128xbf16>
    %cst_69 = arith.constant dense<0.000000e+00> : vector<16x128xf32>
    %155 = tpu.matmul %152, %154, %cst_69 {dimension_numbers = #tpu.dot_dimension_numbers<[1], [0], [0], [1], [0, 0, 1, 1], [], []>} : vector<16x32xbf16>, vector<32x128xbf16>, vector<16x128xf32> -> vector<16x128xf32>
    %c0_70 = arith.constant 0 : index
    %c0_71 = arith.constant 0 : index
    %c0_72 = arith.constant 0 : index
    %156 = vector.load %arg14[%c0_70, %c0_71, %c0_72] : memref<1x1x128xf32, #tpu.memory_space<vmem>>, vector<1x1x128xf32>
    %157 = vector.shape_cast %156 : vector<1x1x128xf32> to vector<1x128xf32>
    %158 = vector.broadcast %157 : vector<1x128xf32> to vector<16x128xf32>
    %159 = arith.addf %155, %158 : vector<16x128xf32>
    %cst_73 = arith.constant 5.000000e-01 : f32
    %160 = vector.broadcast %cst_73 : f32 to vector<16x128xf32>
    %161 = arith.mulf %160, %159 : vector<16x128xf32>
    %cst_74 = arith.constant 0.707106769 : f32
    %162 = vector.broadcast %cst_74 : f32 to vector<16x128xf32>
    %163 = arith.mulf %159, %162 : vector<16x128xf32>
    %cst_75 = arith.constant 0.000000e+00 : f32
    %164 = vector.broadcast %cst_75 : f32 to vector<16x128xf32>
    %165 = arith.cmpf oge, %163, %164 : vector<16x128xf32>
    %cst_76 = arith.constant 1.000000e+00 : f32
    %cst_77 = arith.constant -1.000000e+00 : f32
    %166 = vector.broadcast %cst_76 : f32 to vector<16x128xf32>
    %167 = vector.broadcast %cst_77 : f32 to vector<16x128xf32>
    %168 = arith.select %165, %166, %167 : vector<16x128xi1>, vector<16x128xf32>
    %169 = math.absf %163 : vector<16x128xf32>
    %cst_78 = arith.constant 0.327591091 : f32
    %170 = vector.broadcast %cst_78 : f32 to vector<16x128xf32>
    %171 = arith.mulf %170, %169 : vector<16x128xf32>
    %cst_79 = arith.constant 1.000000e+00 : f32
    %172 = vector.broadcast %cst_79 : f32 to vector<16x128xf32>
    %173 = arith.addf %172, %171 : vector<16x128xf32>
    %cst_80 = arith.constant 1.000000e+00 : f32
    %174 = vector.broadcast %cst_80 : f32 to vector<16x128xf32>
    %175 = arith.divf %174, %173 : vector<16x128xf32>
    %cst_81 = arith.constant 1.06140542 : f32
    %176 = vector.broadcast %cst_81 : f32 to vector<16x128xf32>
    %177 = arith.mulf %176, %175 : vector<16x128xf32>
    %cst_82 = arith.constant -1.45315206 : f32
    %178 = vector.broadcast %cst_82 : f32 to vector<16x128xf32>
    %179 = arith.addf %177, %178 : vector<16x128xf32>
    %180 = arith.mulf %179, %175 : vector<16x128xf32>
    %cst_83 = arith.constant 1.42141378 : f32
    %181 = vector.broadcast %cst_83 : f32 to vector<16x128xf32>
    %182 = arith.addf %180, %181 : vector<16x128xf32>
    %183 = arith.mulf %182, %175 : vector<16x128xf32>
    %cst_84 = arith.constant -0.284496725 : f32
    %184 = vector.broadcast %cst_84 : f32 to vector<16x128xf32>
    %185 = arith.addf %183, %184 : vector<16x128xf32>
    %186 = arith.mulf %185, %175 : vector<16x128xf32>
    %cst_85 = arith.constant 0.254829586 : f32
    %187 = vector.broadcast %cst_85 : f32 to vector<16x128xf32>
    %188 = arith.addf %186, %187 : vector<16x128xf32>
    %189 = arith.mulf %188, %175 : vector<16x128xf32>
    %cst_86 = arith.constant 0.000000e+00 : f32
    %190 = vector.broadcast %cst_86 : f32 to vector<16x128xf32>
    %191 = arith.subf %190, %169 : vector<16x128xf32>
    %192 = arith.mulf %191, %169 : vector<16x128xf32>
    %193 = math.exp %192 : vector<16x128xf32>
    %194 = arith.mulf %189, %193 : vector<16x128xf32>
    %cst_87 = arith.constant 1.000000e+00 : f32
    %195 = vector.broadcast %cst_87 : f32 to vector<16x128xf32>
    %196 = arith.subf %195, %194 : vector<16x128xf32>
    %197 = arith.mulf %168, %196 : vector<16x128xf32>
    %cst_88 = arith.constant 1.000000e+00 : f32
    %198 = vector.broadcast %cst_88 : f32 to vector<16x128xf32>
    %199 = arith.addf %198, %197 : vector<16x128xf32>
    %200 = arith.mulf %161, %199 : vector<16x128xf32>
    %201 = arith.truncf %200 : vector<16x128xf32> to vector<16x128xbf16>
    %c0_89 = arith.constant 0 : index
    %c0_90 = arith.constant 0 : index
    %c0_91 = arith.constant 0 : index
    %202 = vector.load %arg15[%c0_89, %c0_90, %c0_91] : memref<1x128x32xbf16, #tpu.memory_space<vmem>>, vector<1x128x32xbf16>
    %203 = vector.shape_cast %202 : vector<1x128x32xbf16> to vector<128x32xbf16>
    %cst_92 = arith.constant dense<0.000000e+00> : vector<16x32xf32>
    %204 = tpu.matmul %201, %203, %cst_92 {dimension_numbers = #tpu.dot_dimension_numbers<[1], [0], [0], [1], [0, 0, 1, 1], [], []>} : vector<16x128xbf16>, vector<128x32xbf16>, vector<16x32xf32> -> vector<16x32xf32>
    %c0_93 = arith.constant 0 : index
    %c0_94 = arith.constant 0 : index
    %c0_95 = arith.constant 0 : index
    %205 = vector.load %arg16[%c0_93, %c0_94, %c0_95] : memref<1x1x32xf32, #tpu.memory_space<vmem>>, vector<1x1x32xf32>
    %206 = vector.shape_cast %205 : vector<1x1x32xf32> to vector<1x32xf32>
    %207 = vector.broadcast %206 : vector<1x32xf32> to vector<16x32xf32>
    %208 = arith.addf %204, %207 : vector<16x32xf32>
    %209 = arith.addf %125, %208 : vector<16x32xf32>
    %c0_96 = arith.constant 0 : index
    %c0_97 = arith.constant 0 : index
    %210 = vector.load %arg20[%c0_96, %c0_97] : memref<16x32xf32, #tpu.memory_space<vmem>>, vector<16x32xf32>
    tpu.vector_store %arg20[%c0_96, %c0_97], %209 {strides = array<i32>} : memref<16x32xf32, #tpu.memory_space<vmem>>, vector<16x32xf32>,
    %c1_i32 = arith.constant 1 : i32
    %211 = arith.cmpi eq, %arg0, %c1_i32 : i32
    %212 = arith.extui %211 : i1 to i32
    %c0_i32_98 = arith.constant 0 : i32
    %213 = arith.cmpi ne, %212, %c0_i32_98 : i32
    scf.if %213 {
      %214 = arith.truncf %209 : vector<16x32xf32> to vector<16x32xbf16>
      %c0_99 = arith.constant 0 : index
      %c0_100 = arith.constant 0 : index
      %215 = vector.load %arg17[%c0_99, %c0_100] : memref<32x128xbf16, #tpu.memory_space<vmem>>, vector<32x128xbf16>
      %cst_101 = arith.constant dense<0.000000e+00> : vector<16x128xf32>
      %216 = tpu.matmul %214, %215, %cst_101 {dimension_numbers = #tpu.dot_dimension_numbers<[1], [0], [0], [1], [0, 0, 1, 1], [], []>} : vector<16x32xbf16>, vector<32x128xbf16>, vector<16x128xf32> -> vector<16x128xf32>
      %c0_102 = arith.constant 0 : index
      %c0_103 = arith.constant 0 : index
      %217 = vector.load %arg18[%c0_102, %c0_103] : memref<1x128xf32, #tpu.memory_space<vmem>>, vector<1x128xf32>
      %218 = vector.broadcast %217 : vector<1x128xf32> to vector<16x128xf32>
      %219 = arith.addf %216, %218 : vector<16x128xf32>
      %c0_104 = arith.constant 0 : index
      %c0_105 = arith.constant 0 : index
      %220 = vector.load %arg19[%c0_104, %c0_105] : memref<16x128xf32, #tpu.memory_space<vmem>>, vector<16x128xf32>
      tpu.vector_store %arg19[%c0_104, %c0_105], %219 {strides = array<i32>} : memref<16x128xf32, #tpu.memory_space<vmem>>, vector<16x128xf32>,
    } else {
    }
    return
  }
  func.func @transform_0(%arg0: i32) -> (i32, i32) {
    %c0_i32 = arith.constant 0 : i32
    %c0_i32_0 = arith.constant 0 : i32
    %c0_i32_1 = arith.constant 0 : i32
    return %c0_i32, %c0_i32_0 : i32, i32
  }
  func.func @transform_1(%arg0: i32) -> (i32, i32) {
    %c0_i32 = arith.constant 0 : i32
    %c0_i32_0 = arith.constant 0 : i32
    %c0_i32_1 = arith.constant 0 : i32
    return %c0_i32, %c0_i32_0 : i32, i32
  }
  func.func @transform_2(%arg0: i32) -> (i32, i32) {
    %c0_i32 = arith.constant 0 : i32
    %c0_i32_0 = arith.constant 0 : i32
    %c0_i32_1 = arith.constant 0 : i32
    return %c0_i32, %c0_i32_0 : i32, i32
  }
  func.func @transform_3(%arg0: i32) -> (i32, i32) {
    %c0_i32 = arith.constant 0 : i32
    %c0_i32_0 = arith.constant 0 : i32
    %c0_i32_1 = arith.constant 0 : i32
    return %c0_i32, %c0_i32_0 : i32, i32
  }
  func.func @transform_4(%arg0: i32) -> (i32, i32) {
    %c0_i32 = arith.constant 0 : i32
    %c0_i32_0 = arith.constant 0 : i32
    %c0_i32_1 = arith.constant 0 : i32
    return %c0_i32, %c0_i32_0 : i32, i32
  }
  func.func @transform_5(%arg0: i32) -> (i32, i32, i32) {
    %c0_i32 = arith.constant 0 : i32
    %c0_i32_0 = arith.constant 0 : i32
    %c0_i32_1 = arith.constant 0 : i32
    return %arg0, %c0_i32, %c0_i32_0 : i32, i32, i32
  }
  func.func @transform_6(%arg0: i32) -> (i32, i32, i32) {
    %c0_i32 = arith.constant 0 : i32
    %c0_i32_0 = arith.constant 0 : i32
    %c0_i32_1 = arith.constant 0 : i32
    return %arg0, %c0_i32, %c0_i32_0 : i32, i32, i32
  }
  func.func @transform_7(%arg0: i32) -> (i32, i32, i32) {
    %c0_i32 = arith.constant 0 : i32
    %c0_i32_0 = arith.constant 0 : i32
    %c0_i32_1 = arith.constant 0 : i32
    return %arg0, %c0_i32, %c0_i32_0 : i32, i32, i32
  }
  func.func @transform_8(%arg0: i32) -> (i32, i32, i32) {
    %c0_i32 = arith.constant 0 : i32
    %c0_i32_0 = arith.constant 0 : i32
    %c0_i32_1 = arith.constant 0 : i32
    return %arg0, %c0_i32, %c0_i32_0 : i32, i32, i32
  }
  func.func @transform_9(%arg0: i32) -> (i32, i32, i32) {
    %c0_i32 = arith.constant 0 : i32
    %c0_i32_0 = arith.constant 0 : i32
    %c0_i32_1 = arith.constant 0 : i32
    return %arg0, %c0_i32, %c0_i32_0 : i32, i32, i32
  }
  func.func @transform_10(%arg0: i32) -> (i32, i32, i32) {
    %c0_i32 = arith.constant 0 : i32
    %c0_i32_0 = arith.constant 0 : i32
    %c0_i32_1 = arith.constant 0 : i32
    return %arg0, %c0_i32, %c0_i32_0 : i32, i32, i32
  }
  func.func @transform_11(%arg0: i32) -> (i32, i32, i32) {
    %c0_i32 = arith.constant 0 : i32
    %c0_i32_0 = arith.constant 0 : i32
    %c0_i32_1 = arith.constant 0 : i32
    return %arg0, %c0_i32, %c0_i32_0 : i32, i32, i32
  }
  func.func @transform_12(%arg0: i32) -> (i32, i32, i32) {
    %c0_i32 = arith.constant 0 : i32
    %c0_i32_0 = arith.constant 0 : i32
    %c0_i32_1 = arith.constant 0 : i32
    return %arg0, %c0_i32, %c0_i32_0 : i32, i32, i32
  }
  func.func @transform_13(%arg0: i32) -> (i32, i32, i32) {
    %c0_i32 = arith.constant 0 : i32
    %c0_i32_0 = arith.constant 0 : i32
    %c0_i32_1 = arith.constant 0 : i32
    return %arg0, %c0_i32, %c0_i32_0 : i32, i32, i32
  }
  func.func @transform_14(%arg0: i32) -> (i32, i32, i32) {
    %c0_i32 = arith.constant 0 : i32
    %c0_i32_0 = arith.constant 0 : i32
    %c0_i32_1 = arith.constant 0 : i32
    return %arg0, %c0_i32, %c0_i32_0 : i32, i32, i32
  }
  func.func @transform_15(%arg0: i32) -> (i32, i32, i32) {
    %c0_i32 = arith.constant 0 : i32
    %c0_i32_0 = arith.constant 0 : i32
    %c0_i32_1 = arith.constant 0 : i32
    return %arg0, %c0_i32, %c0_i32_0 : i32, i32, i32
  }
  func.func @transform_16(%arg0: i32) -> (i32, i32) {
    %c0_i32 = arith.constant 0 : i32
    %c0_i32_0 = arith.constant 0 : i32
    %c0_i32_1 = arith.constant 0 : i32
    return %c0_i32, %c0_i32_0 : i32, i32
  }
  func.func @transform_17(%arg0: i32) -> (i32, i32) {
    %c0_i32 = arith.constant 0 : i32
    %c0_i32_0 = arith.constant 0 : i32
    %c0_i32_1 = arith.constant 0 : i32
    return %c0_i32, %c0_i32_0 : i32, i32
  }
  func.func @transform_18(%arg0: i32) -> (i32, i32) {
    %c0_i32 = arith.constant 0 : i32
    %c0_i32_0 = arith.constant 0 : i32
    %c0_i32_1 = arith.constant 0 : i32
    return %c0_i32, %c0_i32_0 : i32, i32
  }
}

</mosaic_0001>

<bundles_post_ra>
// kernel: tile.25
= control target key start
LH: loop header
LB: loop body
LE: loop exit
PB: predicated region body
PF: predicated region fallthrough
CT: control target
= control target key end

     0   :  { %vm42_vm0 = vcmask 1047556   ;;  %vm44_vm1 = vcmask 64512   ;;  %s93_s22 = smov 8   ;;  %s94_s25 = smov 16   ;;  %vm54_vm2 = vcmask 261312   ;;  %vm64_vm3 = vcmask 195712   ;;  %s146_s0 = inlined_call_operand.vmem [shape: f32[8,4,8], index: 0, kind: input, shape index: {}]   ;;  %s147_s1 = inlined_call_operand.vmem [shape: f32[8,32], index: 1, kind: output, shape index: {}]  }
   0x1   :  { %v82_v0 = vld [vmem:[%s146_s0 + $0x1c] sm:$0xf]  ;;  %v83_v1 = vld [vmem:[%s146_s0 + $0x18] sm:$0xf]  ;;  %v84_v2 = vld [vmem:[%s146_s0 + $0x14] sm:$0xf] }
   0x2   :  { %8 = vst [vmem:[#allocation0 + $0x38] sm:$0xf] %v82_v0  ;;  %13 = vst [vmem:[#allocation0 + $0x30] sm:$0xf] %v83_v1  ;;  %v85_v3 = vld [vmem:[%s146_s0 + $0x10] sm:$0xf] }
   0x3   :  { %18 = vst [vmem:[#allocation0 + $0x28] sm:$0xf] %v84_v2  ;;  %v86_v4 = vld [vmem:[%s146_s0 + $0xc] sm:$0xf]  ;;  %v87_v5 = vld [vmem:[%s146_s0 + $0x8] sm:$0xf] }
   0x4   :  { %23 = vst [vmem:[#allocation0 + $0x20] sm:$0xf] %v85_v3  ;;  %28 = vst [vmem:[#allocation0 + $0x18] sm:$0xf] %v86_v4  ;;  %v88_v6 = vld [vmem:[%s146_s0 + $0x4] sm:$0xf] }
   0x5   :  { %33 = vst [vmem:[#allocation0 + $0x10] sm:$0xf] %v87_v5  ;;  %v38_v7 = vld [vmem:[%s146_s0] sm:$0xf]  ;;  %37 = vst [vmem:[#allocation0 + $0x8] sm:$0xf] %v88_v6 }
   0x6   :  { %39 = vst [vmem:[#allocation0] sm:$0xf] %v38_v7  ;;  %s92_s0 = smov 24   ;;  %vm74_vm4 = vcmask 130112  }
   0xb   :  { %v49_v8 = vld [vmem:[#allocation0 + $0x3] ss:$8 sm:$0xf0]   ;;  %v59_v9 = vld [vmem:[#allocation0 + $0x2] ss:$8 sm:$0xf0]  }
   0xc   :  { %v69_v14 = vld [vmem:[#allocation0 + $0x1] ss:$8 sm:$0xf0]   ;;  %v41_v17 = vld [vmem:[#allocation0] ss:$8 sm:$0xf0]  }
   0xd   :  { %v47_v10 = vld [vmem:[#allocation0 + $0x3] ss:$8 sm:$0xf]   ;;  %v57_v11 = vld [vmem:[#allocation0 + $0x2] ss:$8 sm:$0xf]  }
   0xe   :  { %v51_v12 = vsel %vm42_vm0, %v49_v8, %v47_v10  ;;  %v67_v13 = vld [vmem:[#allocation0 + $0x1] ss:$8 sm:$0xf]   ;;  %v40_v16 = vld [vmem:[#allocation0] ss:$8 sm:$0xf]   ;;  %v61_v18 = vsel %vm42_vm0, %v59_v9, %v57_v11 }
   0xf   :  { %52 = vrot.lane.b32.xlu0 %v51_v12, %s92_s0  ;;  %v71_v15 = vsel %vm42_vm0, %v69_v14, %v67_v13  ;;  %v43_v19 = vsel %vm42_vm0, %v41_v17, %v40_v16 }
  0x10   :  { %72 = vrot.lane.b32.xlu1 %v71_v15, %s93_s22  ;;  %45 = vst.msk [vmem:[%s147_s1] sm:$0xff] %vm44_vm1, %v43_v19  }
  0x13   :  { %62 = vrot.lane.b32.xlu0 %v61_v18, %s94_s25 }
  0x81   :  { %v53_v20 = vpop.permute.xlu0 %52  }
  0x82   :  { %55 = vst.msk [vmem:[%s147_s1] sm:$0xff] %vm54_vm2, %v53_v20   ;;  %v73_v21 = vpop.permute.xlu1 %72  }
  0x85   :  { %v63_v22 = vpop.permute.xlu0 %62  }
  0x86   :  { %65 = vst.msk [vmem:[%s147_s1] sm:$0xff] %vm64_vm3, %v63_v22  }
  0x87   :  { %75 = vst.msk [vmem:[%s147_s1] sm:$0xff] %vm74_vm4, %v73_v21  }

// kernel: _lambda_.1
= control target key start
LH: loop header
LB: loop body
LE: loop exit
PB: predicated region body
PF: predicated region fallthrough
CT: control target
= control target key end

     0   :  { %s2867_s0 = inlined_call_operand.vmem [shape: f32[16,32], index: 0, kind: input, shape index: {}]   ;;  %s2868_s1 = inlined_call_operand.vmem [shape: bf16[96,96], index: 1, kind: input, shape index: {}]   ;;  %s2869_s2 = inlined_call_operand.vmem [shape: f32[16,96], index: 2, kind: input, shape index: {}]   ;;  %s2870_s3 = inlined_call_operand.vmem [shape: f32[16,96], index: 3, kind: input, shape index: {}]   ;;  %s2871_s4 = inlined_call_operand.vmem [shape: f32[16,16], index: 4, kind: input, shape index: {}]   ;;  %s2872_s5 = inlined_call_operand.vmem [shape: f32[2,1,32], index: 5, kind: input, shape index: {}]   ;;  %s2873_s6 = inlined_call_operand.vmem [shape: f32[2,1,32], index: 6, kind: input, shape index: {}]   ;;  %s2874_s7 = inlined_call_operand.vmem [shape: bf16[2,32,96], index: 7, kind: input, shape index: {}]   ;;  %s2875_s8 = inlined_call_operand.vmem [shape: bf16[2,32,32], index: 8, kind: input, shape index: {}]   ;;  %s2876_s9 = inlined_call_operand.vmem [shape: f32[2,1,32], index: 9, kind: input, shape index: {}]   ;;  %s2877_s10 = inlined_call_operand.vmem [shape: f32[2,1,32], index: 10, kind: input, shape index: {}]   ;;  %s2878_s11 = inlined_call_operand.vmem [shape: f32[2,1,32], index: 11, kind: input, shape index: {}]   ;;  %s2879_s12 = inlined_call_operand.vmem [shape: bf16[2,32,128], index: 12, kind: input, shape index: {}]   ;;  %s2880_s13 = inlined_call_operand.vmem [shape: f32[2,1,128], index: 13, kind: input, shape index: {}]   ;;  %s2881_s14 = inlined_call_operand.vmem [shape: bf16[2,128,32], index: 14, kind: input, shape index: {}]   ;;  %s2882_s15 = inlined_call_operand.vmem [shape: f32[2,1,32], index: 15, kind: input, shape index: {}]   ;;  %s2883_s16 = inlined_call_operand.vmem [shape: bf16[32,128], index: 16, kind: input, shape index: {}]   ;;  %s2884_s17 = inlined_call_operand.vmem [shape: f32[1,128], index: 17, kind: input, shape index: {}]   ;;  %s2885_s18 = inlined_call_operand.hbm [shape: f32[16,128], index: 18, kind: output, shape index: {}]  }
   0x1   :  { %2892 = sst [smem:[#allocation8_spill]] %s2867_s0 }
   0x2   :  { %2893 = sst [smem:[#allocation9_spill]] %s2868_s1 }
   0x3   :  { %2894 = sst [smem:[#allocation10_spill]] %s2869_s2 }
   0x4   :  { %2895 = sst [smem:[#allocation11_spill]] %s2874_s7 }
   0x5   :  { %2896 = sst [smem:[#allocation12_spill]] %s2875_s8 }
   0x6   :  { %2897 = sst [smem:[#allocation13_spill]] %s2876_s9 }
   0x7   :  { %2898 = sst [smem:[#allocation14_spill]] %s2883_s16 }
   0x8   :  { %2899 = sst [smem:[#allocation15_spill]] %s2884_s17 }
   0x9   :  { %2900 = sst [smem:[#allocation16_spill]] %s2885_s18 }
   0xa   :  { %23 = vsyncpa [#allocation5], 0  ;;  %s2528_s27 = smov 0  }
   0xb LB: > { %2901 = sst [smem:[#allocation7_spill]] %s2410_s27  ;;  %s2534_s28 = sadd.s32 4294967295, %s2410_s27   ;;  %s2410_s27 = sphi %s2528_s27, %s29_s27  }
   0xc   : > { %p2047_p0 = scmp.ge.s32.totalorder %s2410_s27, 1  ;;  %p594_p1 = scmp.lt.s32.totalorder %s2410_s27, 3 }
   0xe   : > { %p595_p2 = pnand %p2047_p0, %p594_p1 }
   0xf   : > { %p679_p3 = scmp.lt.s32.totalorder (!%p595_p2), %s2534_s28, 1  ;;  %s2903_s7 = sld [smem:[#allocation11_spill]] (!%p595_p2) }
  0x10   : > { %598 = sbr.rel (%p595_p2) target bundleno = 3662 (0xe4e), region = 92  ;;  %s2904_s8 = sld [smem:[#allocation12_spill]] (!%p595_p2) }
  0x11   : > { %p2056_p4 = scmp.ne.s32.totalorder (!%p595_p2), %s2534_s28, 0 }
  0x17   : > { %s2540_s29 = scalar_select %p679_p3, %s2534_s28, 1 }
  0x18   : > { %724 = sbr.rel (%p2056_p4) target bundleno = 32 (0x20), region = 96  ;;  %s2905_s20 = sld [smem:[#allocation8_spill]] (!%p2056_p4)  ;;  %vm727_vm0 = vcmask (!%p2056_p4), 261120  }
  0x19   : > { %s2105_s22 = sshll.u32 %s2540_s29, 4  ;;  %s703_s16 = scalar_lea.vmem %s2878_s11, %s2540_s29 }
  0x1a   : > { %s2558_s30 = scalar_lea.vmem %s2903_s7, %s2105_s22  ;;  %s2563_s18 = scalar_lea.vmem %s2904_s8, %s2105_s22 }
  0x1b   : > { %s2576_s24 = scalar_lea.vmem %s2879_s12, %s2105_s22  ;;  %s711_s7 = scalar_lea.vmem %s2880_s13, %s2540_s29 }
  0x1c   : > { %s2108_s27 = sshll.u32 %s2540_s29, 6  ;;  %s719_s9 = scalar_lea.vmem %s2882_s15, %s2540_s29 }
  0x1d   : > { %s2590_s1 = scalar_lea.vmem %s2881_s14, %s2108_s27 }
  0x1e   : > { %v725_v0 = vld [vmem:[%s2905_s20] sm:$0xff] (!%p2056_p4)  ;;  %v726_v1 = vld [vmem:[%s2905_s20 + $0x8] sm:$0xff] (!%p2056_p4) }
  0x1f   : > { %728 = vst.msk [vmem:[#allocation2] sm:$0xff] %vm727_vm0, %v725_v0  ;;  %729 = vst.msk [vmem:[#allocation2 + $0x8] sm:$0xff] %vm727_vm0, %v726_v1 }
  0x20 PF: > { %vm734_vm1 = vcmask 261120   ;;  %v2304_v16 = vld [vmem:[%s2558_s30] sm:$0xff]   ;;  %v2412_v17 = vmov 0.0   ;;  %v2305_v18 = vld [vmem:[%s2558_s30 + $0x8] sm:$0xff]   ;;  %vm2413_vm2 = vmmov 0   ;;  %s2906_s25 = scalar_lea.vmem %s2872_s5, %s2540_s29  ;;  %s2907_s0 = scalar_lea.vmem %s2873_s6, %s2540_s29  ;;  %vm888_vm3 = vcmask 785408  }
  0x21   : > { %2153 = vmatprep.subr.bf16.mxu1 %v2412_v17  ;;  %2183 = vmatprep.subr.bf16.mxu0 %v2412_v17  ;;  %v2057_v27 = vld [vmem:[%s2906_s25] ss:$0 sm:$0xff]  ;;  %s2908_s21 = sld [smem:[#allocation9_spill]]  ;;  %s2909_s2 = sld [smem:[#allocation10_spill]]  ;;  %v938_v51 = vld [vmem:[%s2870_s3 + $0x8] sm:$0xff]  ;;  %vm949_vm4 = vcmask 64512  }
  0x22   : > { %2154 = vmatpush3.bf16.msra.mxu1 %v2304_v16  ;;  %2157 = vmatprep.mubr.msk.bf16.mxu1 %vm2413_vm2, %v2412_v17  ;;  %v2058_v31 = vld [vmem:[%s2907_s0] ss:$0 sm:$0xff]  ;;  %s2414_s0 = smov 96   ;;  %s2415_s17 = smov 88   ;;  %vm997_vm5 = vcmask 130048   ;;  %vm1199_vm6 = vcmask 130112  }
  0x23   : > { %2155 = vmatprep.subr.bf16.mxu1 %v2412_v17  ;;  %2185 = vmatprep.mubr.msk.bf16.mxu0 %vm2413_vm2, %v2412_v17  ;;  %v937_v48 = vld [vmem:[%s2870_s3] sm:$0xff]  ;;  %s2416_s19 = smov 120   ;;  %s2417_s22 = smov 80   ;;  %vm1331_vm7 = vcmask 195712   ;;  %vm1463_vm8 = vcmask 261312  }
  0x24   : > { %s2418_s23 = smov 72   ;;  %v2688_v0 = vld [vmem:[%s2871_s4] sm:$0xff]  ;;  %s2419_s27 = smov 64  }
  0x25   : > { %s2425_s8 = smov 8   ;;  %s2426_s30 = smov 16  }
  0x26   : > { %v2599_v2 = vld [vmem:[#allocation2] sm:$0xff]  ;;  %v2601_v3 = vld [vmem:[#allocation2 + $0x8] sm:$0xff]  ;;  %2156 = vmatpush3.bf16.msra.mxu1 %v2305_v18  ;;  %s2427_s25 = smov 24   ;;  %p2096_p5 = scmp.ne.s32.totalorder %s2534_s28, 1 }
  0x27   : > { %v735_v4 = vsel %vm734_vm1, %v2599_v2, 0.0  ;;  %v738_v5 = vsel %vm734_vm1, %v2601_v3, 0.0  ;;  %2161 = vmatprep.subr.bf16.mxu1 %v2412_v17  ;;  %v2306_v35 = vld [vmem:[%s2908_s21] sm:$0xff]   ;;  %v2307_v37 = vld [vmem:[%s2908_s21 + $0x8] sm:$0xff]   ;;  %v2308_v38 = vld [vmem:[%s2908_s21 + $0x10] sm:$0xff]   ;;  %vm2430_vm11 = vmmov (!%p2096_p5), 0  }
  0x28   : > { %736 = vadd.xlane.f32.xlu0 %v735_v4  ;;  %v2309_v39 = vld [vmem:[%s2908_s21 + $0x18] sm:$0xff]   ;;  %v2310_v40 = vld [vmem:[%s2908_s21 + $0x20] sm:$0xff]   ;;  %v2311_v41 = vld [vmem:[%s2908_s21 + $0x28] sm:$0xff]  }
  0x29   : > { %v933_v47 = vld [vmem:[%s2909_s2] sm:$0xff]  ;;  %v934_v49 = vld [vmem:[%s2909_s2 + $0x8] sm:$0xff] }
  0x2a   : > { %v2693_v4 = vld [vmem:[%s2871_s4 + $0x8] sm:$0xff] }
  0x2c   : > { %739 = vadd.xlane.f32.xlu0 %v738_v5 }
  0xb5   : > { %v737_v6 = vpop.xlane.xlu0 %736 }
  0xb6   : > { %v742_v7 = vmul.f32 0.03125, %v737_v6 }
  0xb8   : > { %v744_v8 = vsub.f32 %v2599_v2, %v742_v7 }
  0xb9   : > { %v740_v9 = vpop.xlane.xlu0 %739 }
  0xba   : > { %v743_v10 = vmul.f32 0.03125, %v740_v9  ;;  %v746_v11 = vmul.f32 %v744_v8, %v744_v8 }
  0xbc   : > { %v745_v12 = vsub.f32 %v2601_v3, %v743_v10  ;;  %v748_v13 = vsel %vm734_vm1, %v746_v11, 0.0 }
  0xbd   : > { %749 = vadd.xlane.f32.xlu1 %v748_v13 }
  0xbe   : > { %v747_v14 = vmul.f32 %v745_v12, %v745_v12 }
  0xc0   : > { %v751_v15 = vsel %vm734_vm1, %v747_v14, 0.0 }
  0xc1   : > { %752 = vadd.xlane.f32.xlu1 %v751_v15 }
 0x14a   : > { %v750_v19 = vpop.xlane.xlu1 %749 }
 0x14b   : > { %v754_v20 = vmul.f32 0.03125, %v750_v19 }
 0x14d   : > { %v756_v21 = vadd.f32 1e-05, %v754_v20 }
 0x14e   : > { %v753_v22 = vpop.xlane.xlu1 %752 }
 0x14f   : > { %2324 = vrsqrt.f32 %v756_v21  ;;  %v755_v23 = vmul.f32 0.03125, %v753_v22 }
 0x151   : > { %v757_v24 = vadd.f32 1e-05, %v755_v23 }
 0x153   : > { %2326 = vrsqrt.f32 %v757_v24 }
 0x159   : > { %v2325_v25 = vpop.eup %2324 }
 0x15a   : > { %v760_v26 = vmul.f32 %v2325_v25, %v744_v8 }
 0x15c   : > { %v768_v30 = vmul.f32 %v2057_v27, %v760_v26 }
 0x15d   : > { %v2327_v28 = vpop.eup %2326 }
 0x15e   : > { %v761_v29 = vmul.f32 %v2327_v28, %v745_v12  ;;  %v776_v33 = vadd.f32 %v2058_v31, %v768_v30 }
 0x160   : > { %v769_v32 = vmul.f32 %v2057_v27, %v761_v29 }
 0x162   : > { %v777_v34 = vadd.f32 %v2058_v31, %v769_v32 }
 0x164   : > { %v778_v36 = vpack.c.bf16 %v777_v34, %v776_v33 }
 0x166   : > { %2158 = vmatmul.mubr.msk.bf16.vlgmr.msra.gmra.mrb[0].mxu1 %vm734_vm1, %v778_v36 }
 0x167   : > { %2162 = vmatpush3.bf16.msra.mxu1 %v2306_v35  ;;  %2173 = vmatprep.mubr.msk.bf16.mxu1 %vm2413_vm2, %v2412_v17 }
 0x168   : > { %2163 = vmatprep.subr.bf16.mxu1 %v2412_v17 }
 0x16b   : > { %2164 = vmatpush3.bf16.msra.mxu1 %v2307_v37 }
 0x16c   : > { %2165 = vmatprep.subr.bf16.mxu1 %v2412_v17 }
 0x16f   : > { %2166 = vmatpush3.bf16.msra.mxu1 %v2308_v38 }
 0x170   : > { %2167 = vmatprep.subr.bf16.mxu1 %v2412_v17 }
 0x173   : > { %2168 = vmatpush3.bf16.msra.mxu1 %v2309_v39 }
 0x174   : > { %2169 = vmatprep.subr.bf16.mxu1 %v2412_v17 }
 0x177   : > { %2170 = vmatpush3.bf16.msra.mxu1 %v2310_v40 }
 0x178   : > { %2171 = vmatprep.subr.bf16.mxu1 %v2412_v17 }
 0x17b   : > { %2172 = vmatpush3.bf16.msra.mxu1 %v2311_v41 }
 0x17c   : > { %2177 = vmatprep.subr.bf16.mxu1 %v2412_v17 }
 0x239   : > { %v832_v42 = vpop.f32.mrb[0].mxu1 }
 0x23a   : > { %v2159_v43 = vpop.f32.mrb[1].mxu1  ;;  %v935_v52 = vmul.f32 %v933_v47, %v832_v42 }
 0x23b   : > { %v835_v44 = vpop.f32.mrb[2].mxu1 }
 0x23c   : > { %v839_v45 = vpack.c.bf16 %v835_v44, %v832_v42  ;;  %v2160_v46 = vpop.f32.mrb[3].mxu1  ;;  %v936_v56 = vmul.f32 %v934_v49, %v835_v44 }
 0x23e   : > { %2174 = vmatmul.mubr.msk.bf16.vlgmr.msra.gmra.mrb[4].mxu1 %vm888_vm3, %v839_v45 }
 0x23f   : > { %2179 = vmatprep.mubr.msk.bf16.mxu1 %vm2413_vm2, %v2412_v17 }
 0x311   : > { %v926_v50 = vpop.f32.mrb[4].mxu1 }
 0x312   : > { %v939_v53 = vmul.f32 %v937_v48, %v926_v50  ;;  %v2175_v54 = vpop.f32.mrb[5].mxu1 }
 0x313   : > { %v929_v55 = vpop.f32.mrb[6].mxu1 }
 0x314   : > { %v941_v57 = vadd.f32 %v939_v53, %v935_v52  ;;  %v940_v58 = vmul.f32 %v938_v51, %v929_v55  ;;  %v2176_v59 = vpop.f32.mrb[7].mxu1 }
 0x316   : > { %v942_v60 = vadd.f32 %v940_v58, %v936_v56 }
 0x318   : > { %v2672_v61 = vpack.c.bf16 %v942_v60, %v941_v57 }
 0x31a   : > { %947 = vrot.lane.b32.xlu0 %v2672_v61, %s2414_s0  ;;  %s2420_s0 = smov 112  }
 0x31e   : > { %1072 = vrot.lane.b32.xlu0 %v2672_v61, %s2415_s17  ;;  %s2421_s17 = smov 104  }
 0x322   : > { %1070 = vrot.lane.b32.xlu0 %v2672_v61, %s2416_s19  ;;  %s2422_s19 = smov 48  }
 0x326   : > { %1204 = vrot.lane.b32.xlu0 %v2672_v61, %s2417_s22  ;;  %s2423_s22 = smov 56  }
 0x32a   : > { %1336 = vrot.lane.b32.xlu0 %v2672_v61, %s2418_s23  ;;  %s2424_s23 = smov 40  }
 0x38c   : > { %v948_v62 = vpop.permute.xlu0 %947 }
 0x38d   : > { %v954_v63 = vsel %vm949_vm4, %v948_v62, 0 }
 0x38e   : > { %2178 = vmatpush3.bf16.xpose.msra.mxu1 %v954_v63 }
 0x38f   : > { %2195 = vmatprep.subr.bf16.mxu1 %v2412_v17 }
 0x390   : > { %v1073_v27 = vpop.permute.xlu0 %1072 }
 0x391   : > { %v1078_v33 = vsel %vm949_vm4, %v1073_v27, 0 }
 0x394   : > { %v1071_v32 = vpop.permute.xlu0 %1070 }
 0x395   : > { %2180 = vmatmul.mubr.msk.bf16.vlgmr.msra.gmra.mrb[8].mxu1 %vm949_vm4, %v2672_v61 }
 0x396   : > { %2197 = vmatprep.mubr.msk.bf16.mxu1 %vm2413_vm2, %v2412_v17 }
 0x398   : > { %v1205_v34 = vpop.permute.xlu0 %1204 }
 0x399   : > { %v1210_v35 = vsel %vm949_vm4, %v1205_v34, 0 }
 0x39c   : > { %v1337_v36 = vpop.permute.xlu0 %1336 }
 0x39d   : > { %v1342_v38 = vsel %vm949_vm4, %v1337_v36, 0 }
 0x468   : > { %v990_v1 = vpop.f32.mrb[8].mxu1 }
 0x469   : > { %v991_v5 = vadd.f32 %v990_v1, %v2688_v0  ;;  %v2181_v6 = vpop.f32.mrb[9].mxu1 }
 0x46a   : > { %v993_v7 = vpop.f32.mrb[10].mxu1 }
 0x46b   : > { %v994_v8 = vadd.f32 %v993_v7, %v2693_v4  ;;  %v2182_v9 = vpop.f32.mrb[11].mxu1  ;;  %v998_v10 = vsel %vm997_vm5, %v991_v5, -inf }
 0x46c   : > { %999 = vmax.xlane.f32.xlu1 %v998_v10 }
 0x46d   : > { %v1001_v11 = vsel %vm997_vm5, %v994_v8, -inf }
 0x470   : > { %1002 = vmax.xlane.f32.xlu1 %v1001_v11 }
 0x4f9   : > { %v1000_v12 = vpop.xlane.xlu1 %999 }
 0x4fa   : > { %v1004_v13 = vsub.f32 %v991_v5, %v1000_v12 }
 0x4fc   : > { %v1006_v14 = vmul.f32 1.442695, %v1004_v13 }
 0x4fd   : > { %v1003_v15 = vpop.xlane.xlu1 %1002 }
 0x4fe   : > { %2328 = vpow2.f32 %v1006_v14  ;;  %v1005_v16 = vsub.f32 %v994_v8, %v1003_v15 }
 0x500   : > { %v1008_v18 = vmul.f32 1.442695, %v1005_v16 }
 0x502   : > { %2330 = vpow2.f32 %v1008_v18 }
 0x508   : > { %v2329_v19 = vpop.eup %2328 }
 0x509   : > { %v1010_v20 = vsel %vm997_vm5, %v2329_v19, 0.0 }
 0x50a   : > { %1011 = vadd.xlane.f32.xlu1 %v1010_v20 }
 0x50c   : > { %v2331_v21 = vpop.eup %2330 }
 0x50d   : > { %v1013_v22 = vsel %vm997_vm5, %v2331_v21, 0.0 }
 0x50e   : > { %1014 = vadd.xlane.f32.xlu1 %v1013_v22 }
 0x51f   : > { %1021 = vrot.lane.b32.xlu1 %v2672_v61, %s2419_s27  ;;  %s2910_s27 = sld [smem:[#allocation13_spill]] }
 0x523   : > { %1202 = vrot.lane.b32.xlu1 %v2672_v61, %s2420_s0 }
 0x525   : > { %s2911_s0 = scalar_lea.vmem %s2910_s27, %s2540_s29 }
 0x527   : > { %1334 = vrot.lane.b32.xlu1 %v2672_v61, %s2421_s17  ;;  %s2914_s17 = sld [smem:[#allocation15_spill]] (!%p2096_p5) }
 0x597   : > { %v1012_v23 = vpop.xlane.xlu1 %1011 }
 0x598   : > { %2332 = vrcp.f32 %v1012_v23 }
 0x59b   : > { %v1015_v24 = vpop.xlane.xlu1 %1014 }
 0x59c   : > { %2334 = vrcp.f32 %v1015_v24 }
 0x59f   : > { %v1022_v25 = vpop.permute.xlu1 %1021 }
 0x5a0   : > { %2184 = vmatpush3.bf16.msra.mxu0 %v1022_v25 }
 0x5a1   : > { %2189 = vmatprep.subr.bf16.mxu0 %v2412_v17 }
 0x5a2   : > { %v2333_v26 = vpop.eup %2332 }
 0x5a3   : > { %v1018_v29 = vmul.f32 %v2333_v26, %v2329_v19  ;;  %v1203_v37 = vpop.permute.xlu1 %1202 }
 0x5a6   : > { %v2335_v28 = vpop.eup %2334 }
 0x5a7   : > { %v1019_v30 = vmul.f32 %v2335_v28, %v2331_v21  ;;  %v1335_v39 = vpop.permute.xlu1 %1334 }
 0x5a9   : > { %v1020_v31 = vpack.c.bf16 %v1019_v30, %v1018_v29 }
 0x5ab   : > { %2186 = vmatmul.mubr.msk.bf16.vlgmr.msra.gmra.mrb[0].mxu0 %vm997_vm5, %v1020_v31 }
 0x5ac   : > { %2190 = vmatpush3.bf16.xpose.msra.mxu0 %v1078_v33  ;;  %2191 = vmatprep.mubr.msk.bf16.mxu0 %vm2413_vm2, %v2412_v17 }
 0x5ad   : > { %2201 = vmatprep.subr.bf16.mxu0 %v2412_v17 }
 0x5b3   : > { %2192 = vmatmul.mubr.msk.bf16.vlgmr.msra.gmra.mrb[4].mxu0 %vm949_vm4, %v1071_v32 }
 0x5b4   : > { %2202 = vmatpush3.bf16.xpose.msra.mxu0 %v1210_v35  ;;  %2203 = vmatprep.mubr.msk.bf16.mxu0 %vm2413_vm2, %v2412_v17 }
 0x5b5   : > { %2213 = vmatprep.subr.bf16.mxu0 %v2412_v17 }
 0x5bb   : > { %2204 = vmatmul.mubr.msk.bf16.vlgmr.msra.gmra.mrb[8].mxu0 %vm949_vm4, %v1203_v37 }
 0x5bc   : > { %2214 = vmatpush3.bf16.xpose.msra.mxu0 %v1342_v38  ;;  %2215 = vmatprep.mubr.msk.bf16.mxu0 %vm2413_vm2, %v2412_v17 }
 0x5bd   : > { %2225 = vmatprep.subr.bf16.mxu0 %v2412_v17 }
 0x5c3   : > { %2216 = vmatmul.mubr.msk.bf16.vlgmr.msra.gmra.mrb[12].mxu0 %vm949_vm4, %v1335_v39 }
 0x5c4   : > { %2229 = vmatprep.mubr.msk.bf16.mxu0 %vm2413_vm2, %v2412_v17 }
 0x67e   : > { %v1061_v40 = vpop.f32.mrb[0].mxu0 }
 0x67f   : > { %1068 = vst.msk [vmem:[#allocation3] sm:$0xff] %vm949_vm4, %v1061_v40  ;;  %v2187_v41 = vpop.f32.mrb[1].mxu0 }
 0x680   : > { %v1064_v42 = vpop.f32.mrb[2].mxu0 }
 0x681   : > { %1069 = vst.msk [vmem:[#allocation3 + $0x8] sm:$0xff] %vm949_vm4, %v1064_v42  ;;  %v2188_v43 = vpop.f32.mrb[3].mxu0 }
 0x686   : > { %v1114_v44 = vpop.f32.mrb[4].mxu0 }
 0x687   : > { %v1115_v45 = vadd.f32 %v1114_v44, %v2688_v0  ;;  %v2193_v46 = vpop.f32.mrb[5].mxu0 }
 0x688   : > { %v1117_v47 = vpop.f32.mrb[6].mxu0 }
 0x689   : > { %v1118_v48 = vadd.f32 %v1117_v47, %v2693_v4  ;;  %v2194_v49 = vpop.f32.mrb[7].mxu0  ;;  %v1121_v50 = vsel %vm997_vm5, %v1115_v45, -inf }
 0x68a   : > { %1122 = vmax.xlane.f32.xlu0 %v1121_v50 }
 0x68b   : > { %v1124_v51 = vsel %vm997_vm5, %v1118_v48, -inf }
 0x68c   : > { %1125 = vmax.xlane.f32.xlu1 %v1124_v51 }
 0x68e   : > { %v1246_v52 = vpop.f32.mrb[8].mxu0 }
 0x68f   : > { %v1247_v53 = vadd.f32 %v1246_v52, %v2688_v0  ;;  %v2205_v54 = vpop.f32.mrb[9].mxu0 }
 0x690   : > { %v1249_v55 = vpop.f32.mrb[10].mxu0 }
 0x691   : > { %v1250_v56 = vadd.f32 %v1249_v55, %v2693_v4  ;;  %v2206_v57 = vpop.f32.mrb[11].mxu0  ;;  %v1253_v58 = vsel %vm997_vm5, %v1247_v53, -inf }
 0x692   : > { %1254 = vmax.xlane.f32.xlu0 %v1253_v58 }
 0x693   : > { %v1256_v59 = vsel %vm997_vm5, %v1250_v56, -inf }
 0x696   : > { %1257 = vmax.xlane.f32.xlu0 %v1256_v59  ;;  %v1378_v60 = vpop.f32.mrb[12].mxu0 }
 0x697   : > { %v1379_v62 = vadd.f32 %v1378_v60, %v2688_v0  ;;  %v2217_v63 = vpop.f32.mrb[13].mxu0 }
 0x698   : > { %v1381_v1 = vpop.f32.mrb[14].mxu0 }
 0x699   : > { %v1382_v5 = vadd.f32 %v1381_v1, %v2693_v4  ;;  %v2218_v6 = vpop.f32.mrb[15].mxu0  ;;  %v1385_v7 = vsel %vm997_vm5, %v1379_v62, -inf }
 0x69a   : > { %1386 = vmax.xlane.f32.xlu0 %v1385_v7 }
 0x69b   : > { %v1388_v8 = vsel %vm997_vm5, %v1382_v5, -inf }
 0x69c   : > { %1389 = vmax.xlane.f32.xlu1 %v1388_v8 }
 0x717   : > { %v1123_v9 = vpop.xlane.xlu0 %1122 }
 0x718   : > { %v1127_v10 = vsub.f32 %v1115_v45, %v1123_v9 }
 0x719   : > { %v1126_v11 = vpop.xlane.xlu1 %1125 }
 0x71a   : > { %v1129_v12 = vmul.f32 1.442695, %v1127_v10  ;;  %v1128_v13 = vsub.f32 %v1118_v48, %v1126_v11  ;;  %v2312_v10 = vld [vmem:[%s2563_s18] sm:$0xff]   ;;  %v2313_v11 = vld [vmem:[%s2563_s18 + $0x8] sm:$0xff]  }
 0x71b   : > { %2226 = vmatpush3.bf16.msra.mxu0 %v2312_v10  ;;  %v2083_v10 = vld [vmem:[%s711_s7] ss:$0 sm:$0xff] }
 0x71c   : > { %2336 = vpow2.f32 %v1129_v12  ;;  %v1131_v14 = vmul.f32 1.442695, %v1128_v13  ;;  %2227 = vmatprep.subr.bf16.mxu0 %v2412_v17 }
 0x71e   : > { %2338 = vpow2.f32 %v1131_v14 }
 0x71f   : > { %v1255_v0 = vpop.xlane.xlu0 %1254  ;;  %2228 = vmatpush3.bf16.msra.mxu0 %v2313_v11 }
 0x720   : > { %v1259_v15 = vsub.f32 %v1247_v53, %v1255_v0  ;;  %2241 = vmatprep.subr.bf16.mxu0 %v2412_v17 }
 0x722   : > { %v1261_v16 = vmul.f32 1.442695, %v1259_v15 }
 0x723   : > { %v1258_v18 = vpop.xlane.xlu0 %1257 }
 0x724   : > { %2340 = vpow2.f32 %v1261_v16  ;;  %v1260_v4 = vsub.f32 %v1250_v56, %v1258_v18 }
 0x726   : > { %v2337_v19 = vpop.eup %2336  ;;  %v1263_v20 = vmul.f32 1.442695, %v1260_v4 }
 0x727   : > { %v1387_v21 = vpop.xlane.xlu0 %1386  ;;  %v1133_v22 = vsel %vm997_vm5, %v2337_v19, 0.0 }
 0x728   : > { %v2339_v23 = vpop.eup %2338  ;;  %2342 = vpow2.f32 %v1263_v20  ;;  %v1391_v24 = vsub.f32 %v1379_v62, %v1387_v21  ;;  %1134 = vadd.xlane.f32.xlu0 %v1133_v22 }
 0x729   : > { %v1136_v25 = vsel %vm997_vm5, %v2339_v23, 0.0  ;;  %v1390_v33 = vpop.xlane.xlu1 %1389 }
 0x72a   : > { %v1393_v26 = vmul.f32 1.442695, %v1391_v24  ;;  %1137 = vadd.xlane.f32.xlu1 %v1136_v25  ;;  %v1392_v34 = vsub.f32 %v1382_v5, %v1390_v33  ;;  %v2080_v25 = vld [vmem:[%s2911_s0] ss:$0 sm:$0xff] }
 0x72c   : > { %2344 = vpow2.f32 %v1393_v26  ;;  %v1395_v35 = vmul.f32 1.442695, %v1392_v34 }
 0x72e   : > { %v2341_v27 = vpop.eup %2340  ;;  %2346 = vpow2.f32 %v1395_v35 }
 0x72f   : > { %v1265_v28 = vsel %vm997_vm5, %v2341_v27, 0.0 }
 0x730   : > { %1266 = vadd.xlane.f32.xlu0 %v1265_v28 }
 0x732   : > { %v2343_v29 = vpop.eup %2342 }
 0x733   : > { %v1268_v30 = vsel %vm997_vm5, %v2343_v29, 0.0 }
 0x734   : > { %1269 = vadd.xlane.f32.xlu1 %v1268_v30 }
 0x736   : > { %v2345_v31 = vpop.eup %2344 }
 0x737   : > { %v1397_v32 = vsel %vm997_vm5, %v2345_v31, 0.0 }
 0x738   : > { %1398 = vadd.xlane.f32.xlu0 %v1397_v32  ;;  %v2347_v36 = vpop.eup %2346 }
 0x739   : > { %v1400_v37 = vsel %vm997_vm5, %v2347_v36, 0.0 }
 0x745   : > { %1276 = vrot.lane.b32.xlu1 %v2672_v61, %s2422_s19 }
 0x74e   : > { %1144 = vrot.lane.b32.xlu0 %v2672_v61, %s2423_s22 }
 0x769   : > { %1401 = vadd.xlane.f32.xlu1 %v1400_v37 }
 0x77a   : > { %1408 = vrot.lane.b32.xlu1 %v2672_v61, %s2424_s23 }
 0x7b5   : > { %v1135_v39 = vpop.xlane.xlu0 %1134 }
 0x7b7   : > { %v1138_v38 = vpop.xlane.xlu1 %1137 }
 0x7b8   : > { %2348 = vrcp.f32 %v1138_v38 }
 0x7b9   : > { %2350 = vrcp.f32 %v1135_v39 }
 0x7bd   : > { %v1267_v40 = vpop.xlane.xlu0 %1266 }
 0x7c1   : > { %v1270_v41 = vpop.xlane.xlu1 %1269 }
 0x7c2   : > { %2352 = vrcp.f32 %v1270_v41  ;;  %v2349_v42 = vpop.eup %2348 }
 0x7c3   : > { %2354 = vrcp.f32 %v1267_v40  ;;  %v2351_v44 = vpop.eup %2350  ;;  %v1142_v45 = vmul.f32 %v2349_v42, %v2339_v23 }
 0x7c4   : > { %v1141_v46 = vmul.f32 %v2351_v44, %v2337_v19  ;;  %v2315_v44 = vld [vmem:[%s2576_s24 + $0x8] sm:$0xff]  }
 0x7c5   : > { %v1399_v43 = vpop.xlane.xlu0 %1398  ;;  %v1277_v61 = vpop.permute.xlu1 %1276 }
 0x7c6   : > { %v1143_v48 = vpack.c.bf16 %v1142_v45, %v1141_v46  ;;  %2356 = vrcp.f32 %v1399_v43  ;;  %v2314_v43 = vld [vmem:[%s2576_s24] sm:$0xff]   ;;  %s2912_s24 = scalar_lea.vmem %s2877_s10, %s2540_s29 }
 0x7c9   : > { %v1145_v47 = vpop.permute.xlu0 %1144 }
 0x7ca   : > { %2196 = vmatpush3.bf16.msra.mxu1 %v1145_v47 }
 0x7cb   : > { %2207 = vmatprep.subr.bf16.mxu1 %v2412_v17 }
 0x7cc   : > { %v2353_v49 = vpop.eup %2352 }
 0x7cd   : > { %2198 = vmatmul.mubr.msk.bf16.vlgmr.msra.gmra.mrb[12].mxu1 %vm997_vm5, %v1143_v48  ;;  %v2355_v50 = vpop.eup %2354  ;;  %v1274_v51 = vmul.f32 %v2353_v49, %v2343_v29 }
 0x7ce   : > { %2208 = vmatpush3.bf16.msra.mxu1 %v1277_v61  ;;  %2209 = vmatprep.mubr.msk.bf16.mxu1 %vm2413_vm2, %v2412_v17  ;;  %v1273_v52 = vmul.f32 %v2355_v50, %v2341_v27 }
 0x7cf   : > { %2219 = vmatprep.subr.bf16.mxu1 %v2412_v17 }
 0x7d0   : > { %v1275_v53 = vpack.c.bf16 %v1274_v51, %v1273_v52  ;;  %v2357_v56 = vpop.eup %2356  ;;  %v2081_v52 = vld [vmem:[%s2912_s24] ss:$0 sm:$0xff] }
 0x7d1   : > { %v1405_v58 = vmul.f32 %v2357_v56, %v2345_v31  ;;  %v2082_v56 = vld [vmem:[%s703_s16] ss:$0 sm:$0xff] }
 0x7d5   : > { %2210 = vmatmul.mubr.msk.bf16.vlgmr.msra.gmra.mrb[16].mxu1 %vm997_vm5, %v1275_v53 }
 0x7d6   : > { %2221 = vmatprep.mubr.msk.bf16.mxu1 %vm2413_vm2, %v2412_v17 }
 0x7f6   : > { %v1402_v54 = vpop.xlane.xlu1 %1401 }
 0x7f7   : > { %2358 = vrcp.f32 %v1402_v54 }
 0x7fa   : > { %v1409_v55 = vpop.permute.xlu1 %1408 }
 0x7fb   : > { %2220 = vmatpush3.bf16.msra.mxu1 %v1409_v55 }
 0x7fc   : > { %2233 = vmatprep.subr.bf16.mxu1 %v2412_v17 }
 0x801   : > { %v2359_v57 = vpop.eup %2358 }
 0x802   : > { %v1406_v59 = vmul.f32 %v2359_v57, %v2347_v36 }
 0x804   : > { %v1407_v60 = vpack.c.bf16 %v1406_v59, %v1405_v58 }
 0x806   : > { %2222 = vmatmul.mubr.msk.bf16.vlgmr.msra.gmra.mrb[20].mxu1 %vm997_vm5, %v1407_v60 }
 0x807   : > { %2237 = vmatprep.mubr.msk.bf16.mxu1 %vm2413_vm2, %v2412_v17  ;;  %2234 = vmatpush3.bf16.msra.mxu1 %v2314_v43 }
 0x808   : > { %2235 = vmatprep.subr.bf16.mxu1 %v2412_v17 }
 0x80b   : > { %2236 = vmatpush3.bf16.msra.mxu1 %v2315_v44 }
 0x8a0   : > { %v1184_v62 = vpop.f32.mrb[12].mxu1 }
 0x8a1   : > { %1193 = vrot.lane.b32.xlu1 %v1184_v62, %s2425_s8  ;;  %v2199_v63 = vpop.f32.mrb[13].mxu1  ;;  %v2316_v62 = vld [vmem:[%s2590_s1] sm:$0xff]  }
 0x8a2   : > { %v1187_v1 = vpop.f32.mrb[14].mxu1  ;;  %v2317_v63 = vld [vmem:[%s2590_s1 + $0x8] sm:$0xff]  }
 0x8a3   : > { %1195 = vrot.lane.b32.xlu0 %v1187_v1, %s2425_s8  ;;  %v2200_v5 = vpop.f32.mrb[15].mxu1  ;;  %v2318_v1 = vld [vmem:[%s2590_s1 + $0x10] sm:$0xff]  }
 0x8a4   : > { %v2319_v5 = vld [vmem:[%s2590_s1 + $0x18] sm:$0xff]  }
 0x8a8   : > { %v1316_v6 = vpop.f32.mrb[16].mxu1 }
 0x8a9   : > { %1325 = vrot.lane.b32.xlu1 %v1316_v6, %s2426_s30  ;;  %v2211_v7 = vpop.f32.mrb[17].mxu1  ;;  %v2320_v6 = vld [vmem:[%s2590_s1 + $0x20] sm:$0xff]  }
 0x8aa   : > { %v1319_v8 = vpop.f32.mrb[18].mxu1  ;;  %v2321_v7 = vld [vmem:[%s2590_s1 + $0x28] sm:$0xff]  }
 0x8ab   : > { %1327 = vrot.lane.b32.xlu0 %v1319_v8, %s2426_s30  ;;  %v2212_v9 = vpop.f32.mrb[19].mxu1  ;;  %v2322_v8 = vld [vmem:[%s2590_s1 + $0x30] sm:$0xff]  }
 0x8ac   : > { %v2323_v9 = vld [vmem:[%s2590_s1 + $0x38] sm:$0xff]  }
 0x8d9   : > { %v1448_v12 = vpop.f32.mrb[20].mxu1 }
 0x8da   : > { %1457 = vrot.lane.b32.xlu1 %v1448_v12, %s2427_s25  ;;  %v2223_v13 = vpop.f32.mrb[21].mxu1 }
 0x8db   : > { %v1451_v14 = vpop.f32.mrb[22].mxu1 }
 0x8dc   : > { %1459 = vrot.lane.b32.xlu0 %v1451_v14, %s2427_s25  ;;  %v2224_v0 = vpop.f32.mrb[23].mxu1 }
 0x913   : > { %v1194_v15 = vpop.permute.xlu1 %1193 }
 0x914   : > { %1200 = vst.msk [vmem:[#allocation3] sm:$0xff] %vm1199_vm6, %v1194_v15 }
 0x915   : > { %v1196_v16 = vpop.permute.xlu0 %1195 }
 0x916   : > { %1201 = vst.msk [vmem:[#allocation3 + $0x8] sm:$0xff] %vm1199_vm6, %v1196_v16 }
 0x91b   : > { %v1326_v18 = vpop.permute.xlu1 %1325 }
 0x91c   : > { %1332 = vst.msk [vmem:[#allocation3] sm:$0xff] %vm1331_vm7, %v1326_v18 }
 0x91d   : > { %v1328_v4 = vpop.permute.xlu0 %1327 }
 0x91e   : > { %1333 = vst.msk [vmem:[#allocation3 + $0x8] sm:$0xff] %vm1331_vm7, %v1328_v4 }
 0x94c   : > { %v1458_v19 = vpop.permute.xlu1 %1457 }
 0x94d   : > { %1464 = vst.msk [vmem:[#allocation3] sm:$0xff] %vm1463_vm8, %v1458_v19 }
 0x94e   : > { %v1460_v20 = vpop.permute.xlu0 %1459 }
 0x94f   : > { %1465 = vst.msk [vmem:[#allocation3 + $0x8] sm:$0xff] %vm1463_vm8, %v1460_v20 }
 0x954   : > { %v1466_v21 = vld [vmem:[#allocation3] sm:$0xff] }
 0x956   : > { %v1467_v22 = vld [vmem:[#allocation3 + $0x8] sm:$0xff] }
 0x957   : > { %v1468_v23 = vpack.c.bf16 %v1467_v22, %v1466_v21 }
 0x959   : > { %2230 = vmatmul.mubr.msk.bf16.vlgmr.msra.gmra.mrb[16].mxu0 %vm734_vm1, %v1468_v23 }
 0x95a   : > { %2257 = vmatprep.mubr.msk.bf16.mxu0 %vm2413_vm2, %v2412_v17  ;;  %2242 = vmatpush3.bf16.msra.mxu0 %v2316_v62 }
 0x95b   : > { %2243 = vmatprep.subr.bf16.mxu0 %v2412_v17 }
 0x95e   : > { %2244 = vmatpush3.bf16.msra.mxu0 %v2317_v63 }
 0x95f   : > { %2245 = vmatprep.subr.bf16.mxu0 %v2412_v17 }
 0x962   : > { %2246 = vmatpush3.bf16.msra.mxu0 %v2318_v1 }
 0x963   : > { %2247 = vmatprep.subr.bf16.mxu0 %v2412_v17 }
 0x966   : > { %2248 = vmatpush3.bf16.msra.mxu0 %v2319_v5 }
 0x967   : > { %2249 = vmatprep.subr.bf16.mxu0 %v2412_v17 }
 0x96a   : > { %2250 = vmatpush3.bf16.msra.mxu0 %v2320_v6 }
 0x96b   : > { %2251 = vmatprep.subr.bf16.mxu0 %v2412_v17 }
 0x96e   : > { %2252 = vmatpush3.bf16.msra.mxu0 %v2321_v7  ;;  %v2087_v7 = vld [vmem:[%s719_s9] ss:$0 sm:$0xff]  ;;  %s2913_s9 = sld [smem:[#allocation14_spill]] (!%p2096_p5) }
 0x96f   : > { %2253 = vmatprep.subr.bf16.mxu0 %v2412_v17 }
 0x972   : > { %2254 = vmatpush3.bf16.msra.mxu0 %v2322_v8 }
 0x973   : > { %2255 = vmatprep.subr.bf16.mxu0 %v2412_v17 }
 0x976   : > { %2256 = vmatpush3.bf16.msra.mxu0 %v2323_v9 }
 0xa2c   : > { %v1522_v24 = vpop.f32.mrb[16].mxu0 }
 0xa2d   : > { %v1529_v26 = vadd.f32 %v1522_v24, %v2599_v2  ;;  %v2231_v27 = vpop.f32.mrb[17].mxu0 }
 0xa2e   : > { %v1525_v28 = vpop.f32.mrb[18].mxu0 }
 0xa2f   : > { %v2773_v29 = vadd.f32 %v2080_v25, %v1529_v26  ;;  %v1530_v30 = vadd.f32 %v1525_v28, %v2601_v3  ;;  %v2232_v31 = vpop.f32.mrb[19].mxu0 }
 0xa31   : > { %v2776_v32 = vadd.f32 %v2080_v25, %v1530_v30  ;;  %v1542_v33 = vsel %vm734_vm1, %v2773_v29, 0.0 }
 0xa32   : > { %1543 = vadd.xlane.f32.xlu1 %v1542_v33 }
 0xa33   : > { %v1545_v34 = vsel %vm734_vm1, %v2776_v32, 0.0 }
 0xa34   : > { %1546 = vadd.xlane.f32.xlu0 %v1545_v34 }
 0xabf   : > { %v1544_v2 = vpop.xlane.xlu1 %1543 }
 0xac0   : > { %v1548_v35 = vmul.f32 0.03125, %v1544_v2 }
 0xac1   : > { %v1547_v36 = vpop.xlane.xlu0 %1546 }
 0xac2   : > { %v1550_v37 = vsub.f32 %v2773_v29, %v1548_v35  ;;  %v1549_v38 = vmul.f32 0.03125, %v1547_v36 }
 0xac4   : > { %v1551_v3 = vsub.f32 %v2776_v32, %v1549_v38  ;;  %v1552_v39 = vmul.f32 %v1550_v37, %v1550_v37 }
 0xac6   : > { %v1554_v40 = vsel %vm734_vm1, %v1552_v39, 0.0  ;;  %v1553_v41 = vmul.f32 %v1551_v3, %v1551_v3 }
 0xac7   : > { %1555 = vadd.xlane.f32.xlu0 %v1554_v40 }
 0xac8   : > { %v1557_v42 = vsel %vm734_vm1, %v1553_v41, 0.0 }
 0xacb   : > { %1558 = vadd.xlane.f32.xlu0 %v1557_v42 }
 0xb54   : > { %v1556_v45 = vpop.xlane.xlu0 %1555 }
 0xb55   : > { %v1560_v46 = vmul.f32 0.03125, %v1556_v45 }
 0xb57   : > { %v1562_v47 = vadd.f32 1e-05, %v1560_v46 }
 0xb58   : > { %v1559_v48 = vpop.xlane.xlu0 %1558 }
 0xb59   : > { %2360 = vrsqrt.f32 %v1562_v47  ;;  %v1561_v49 = vmul.f32 0.03125, %v1559_v48 }
 0xb5b   : > { %v1563_v61 = vadd.f32 1e-05, %v1561_v49 }
 0xb5d   : > { %2362 = vrsqrt.f32 %v1563_v61 }
 0xb63   : > { %v2361_v50 = vpop.eup %2360 }
 0xb64   : > { %v1566_v51 = vmul.f32 %v2361_v50, %v1550_v37 }
 0xb66   : > { %v1574_v54 = vmul.f32 %v2081_v52, %v1566_v51 }
 0xb67   : > { %v2363_v53 = vpop.eup %2362 }
 0xb68   : > { %v1567_v55 = vmul.f32 %v2363_v53, %v1551_v3  ;;  %v1582_v58 = vadd.f32 %v2082_v56, %v1574_v54 }
 0xb6a   : > { %v1575_v57 = vmul.f32 %v2081_v52, %v1567_v55  ;;  %v2428_v52 = vmov -1.0  }
 0xb6c   : > { %v1583_v59 = vadd.f32 %v2082_v56, %v1575_v57 }
 0xb6e   : > { %v1584_v60 = vpack.c.bf16 %v1583_v59, %v1582_v58 }
 0xb70   : > { %2238 = vmatmul.mubr.msk.bf16.vlgmr.msra.gmra.mrb[24].mxu1 %vm734_vm1, %v1584_v60 }
 0xc43   : > { %v1645_v11 = vpop.f32.mrb[24].mxu1 }
 0xc44   : > { %v1646_v12 = vadd.f32 %v2083_v10, %v1645_v11  ;;  %v2239_v13 = vpop.f32.mrb[25].mxu1 }
 0xc45   : > { %v1648_v14 = vpop.f32.mrb[26].mxu1 }
 0xc46   : > { %v1654_v0 = vmul.f32 0.70710677, %v1646_v12  ;;  %v1649_v15 = vadd.f32 %v2083_v10, %v1648_v14  ;;  %v2240_v16 = vpop.f32.mrb[27].mxu1  ;;  %v1652_v60 = vmul.f32 0.5, %v1646_v12 }
 0xc47   : > { %v2429_v16 = vmov (!%p2096_p5), 0.0  }
 0xc48   : > { %v1660_v18 = vand.u32 2147483647, %v1654_v0  ;;  %v1655_v4 = vmul.f32 0.70710677, %v1649_v15  ;;  %vm1656_vm9 = vcmp.ge.f32.partialorder %v1654_v0, 0.0  ;;  %v1653_v62 = vmul.f32 0.5, %v1649_v15  ;;  %2261 = vmatprep.subr.bf16.mxu0 (!%p2096_p5), %v2429_v16 }
 0xc49   : > { %v1658_v53 = vsel %vm1656_vm9, 1.0, %v2428_v52  ;;  %v2372_v15 = vld [vmem:[%s2913_s9] sm:$0xff] (!%p2096_p5)  }
 0xc4a   : > { %v1662_v19 = vmul.f32 0.3275911, %v1660_v18  ;;  %v1661_v20 = vand.u32 2147483647, %v1655_v4  ;;  %v1688_v23 = vsub.f32 0.0, %v1660_v18  ;;  %vm1657_vm10 = vcmp.ge.f32.partialorder %v1655_v4, 0.0 }
 0xc4b   : > { %v1659_v57 = vsel %vm1657_vm10, 1.0, %v2428_v52 }
 0xc4c   : > { %v1664_v21 = vadd.f32 1.0, %v1662_v19  ;;  %v1663_v17 = vmul.f32 0.3275911, %v1661_v20  ;;  %v1689_v24 = vsub.f32 0.0, %v1661_v20  ;;  %v1690_v26 = vmul.f32 %v1688_v23, %v1660_v18  ;;  %v2097_v18 = vld [vmem:[%s2914_s17] ss:$0 sm:$0xff] (!%p2096_p5) }
 0xc4e   : > { %2364 = vrcp.f32 %v1664_v21  ;;  %v1665_v22 = vadd.f32 1.0, %v1663_v17  ;;  %v1691_v31 = vmul.f32 %v1689_v24, %v1661_v20  ;;  %v1692_v33 = vmul.f32 1.442695, %v1690_v26 }
 0xc50   : > { %2366 = vrcp.f32 %v1665_v22  ;;  %v1694_v37 = vmul.f32 1.442695, %v1691_v31 }
 0xc51   : > { %2368 = vpow2.f32 %v1692_v33 }
 0xc52   : > { %2370 = vpow2.f32 %v1694_v37 }
 0xc58   : > { %v2365_v25 = vpop.eup %2364 }
 0xc59   : > { %v1670_v27 = vmul.f32 1.0614054, %v2365_v25 }
 0xc5a   : > { %v2367_v28 = vpop.eup %2366 }
 0xc5b   : > { %v1672_v30 = vadd.f32 -1.4531521, %v1670_v27  ;;  %v1671_v34 = vmul.f32 1.0614054, %v2367_v28  ;;  %v2369_v47 = vpop.eup %2368 }
 0xc5c   : > { %v2371_v50 = vpop.eup %2370 }
 0xc5d   : > { %v1674_v2 = vmul.f32 %v2365_v25, %v1672_v30  ;;  %v1673_v35 = vadd.f32 -1.4531521, %v1671_v34 }
 0xc5f   : > { %v1676_v36 = vadd.f32 1.4214138, %v1674_v2  ;;  %v1675_v38 = vmul.f32 %v2367_v28, %v1673_v35 }
 0xc61   : > { %v1678_v3 = vmul.f32 %v2365_v25, %v1676_v36  ;;  %v1677_v39 = vadd.f32 1.4214138, %v1675_v38 }
 0xc63   : > { %v1680_v40 = vadd.f32 -0.28449672, %v1678_v3  ;;  %v1679_v41 = vmul.f32 %v2367_v28, %v1677_v39 }
 0xc65   : > { %v1682_v42 = vmul.f32 %v2365_v25, %v1680_v40  ;;  %v1681_v43 = vadd.f32 -0.28449672, %v1679_v41 }
 0xc67   : > { %v1684_v44 = vadd.f32 0.2548296, %v1682_v42  ;;  %v1683_v45 = vmul.f32 %v2367_v28, %v1681_v43 }
 0xc69   : > { %v1686_v46 = vmul.f32 %v2365_v25, %v1684_v44  ;;  %v1685_v48 = vadd.f32 0.2548296, %v1683_v45 }
 0xc6b   : > { %v1696_v49 = vmul.f32 %v2369_v47, %v1686_v46  ;;  %v1687_v61 = vmul.f32 %v2367_v28, %v1685_v48 }
 0xc6d   : > { %v1698_v51 = vsub.f32 1.0, %v1696_v49  ;;  %v1697_v54 = vmul.f32 %v2371_v50, %v1687_v61 }
 0xc6f   : > { %v1700_v55 = vmul.f32 %v1698_v51, %v1658_v53  ;;  %v1699_v56 = vsub.f32 1.0, %v1697_v54 }
 0xc71   : > { %v1702_v58 = vadd.f32 1.0, %v1700_v55  ;;  %v1701_v59 = vmul.f32 %v1699_v56, %v1659_v57 }
 0xc73   : > { %v1703_v63 = vadd.f32 1.0, %v1701_v59  ;;  %v1704_v1 = vmul.f32 %v1702_v58, %v1652_v60 }
 0xc75   : > { %v1705_v5 = vmul.f32 %v1703_v63, %v1653_v62 }
 0xc77   : > { %v1706_v6 = vpack.c.bf16 %v1705_v5, %v1704_v1 }
 0xc79   : > { %2258 = vmatmul.mubr.bf16.vlgmr.msra.gmra.mrb[20].mxu0 %v1706_v6 }
 0xc7a   : > { %2262 = vmatpush3.bf16.msra.mxu0 (!%p2096_p5), %v2372_v15  ;;  %2265 = vmatprep.mubr.msk.bf16.mxu0 (!%p2096_p5), %vm2430_vm11, %v2429_v16 }
 0xc7b   : > { %2263 = vmatprep.subr.bf16.mxu0 (!%p2096_p5), %v2429_v16 }
 0xd4c   : > { %v1812_v8 = vpop.f32.mrb[20].mxu0 }
 0xd4d   : > { %v1813_v9 = vadd.f32 %v2087_v7, %v1812_v8  ;;  %v2259_v10 = vpop.f32.mrb[21].mxu0  ;;  %1826 = sbr.rel (%p2096_p5) target bundleno = 3630 (0xe2e), region = 100 }
 0xd4e   : > { %v1815_v11 = vpop.f32.mrb[22].mxu0 }
 0xd4f   : > { %v1819_v13 = vadd.f32 %v1813_v9, %v2773_v29  ;;  %v1816_v14 = vadd.f32 %v2087_v7, %v1815_v11  ;;  %v2260_v0 = vpop.f32.mrb[23].mxu0  ;;  %v2373_v29 = vld [vmem:[%s2913_s9 + $0x8] sm:$0xff] (!%p2096_p5)  }
 0xd50   : > { %2264 = vmatpush3.bf16.msra.mxu0 (!%p2096_p5), %v2373_v29 }
 0xd51   : > { %1821 = vst.msk [vmem:[#allocation2] sm:$0xff] %vm734_vm1, %v1819_v13  ;;  %v1820_v12 = vadd.f32 %v1816_v14, %v2776_v32 }
 0xd53   : > { %1822 = vst.msk [vmem:[#allocation2 + $0x8] sm:$0xff] %vm734_vm1, %v1820_v12  ;;  %v1827_v32 = vpack.c.bf16 (!%p2096_p5), %v1820_v12, %v1819_v13 }
 0xd55   : > { %2266 = vmatmul.mubr.msk.bf16.vlgmr.msra.gmra.mrb[0].mxu0 %vm734_vm1, %v1827_v32 }
 0xe28   : > { %v1888_v4 = vpop.f32.mrb[0].mxu0 }
 0xe29   : > { %v1889_v19 = vadd.f32 %v2097_v18, %v1888_v4  ;;  %v2267_v20 = vpop.f32.mrb[1].mxu0 }
 0xe2a   : > { %v1891_v21 = vpop.f32.mrb[2].mxu0 }
 0xe2b   : > { %1895 = vst [vmem:[#allocation4] sm:$0xff] %v1889_v19  ;;  %v1892_v17 = vadd.f32 %v2097_v18, %v1891_v21  ;;  %v2268_v22 = vpop.f32.mrb[3].mxu0 }
 0xe2d   : > { %1896 = vst [vmem:[#allocation4 + $0x8] sm:$0xff] %v1892_v17 }
 0xe2e PF: > { %p2273_p6 = scmp.eq.s32.totalorder %s2534_s28, 1  ;;  %s2431_s19 = smov [#allocation4]  }
 0xe2f   : > { %s1903_s24 = sshll.u32 %s2431_s19, 4  ;;  %s1904_s24 = int_to_ptr.vmem [resolvable:$true] %s1903_s24 }
 0xe30   : > { %s2374_s22 = scalar_lea.vmem %s1904_s24, 256  ;;  %p2381_p10 = scmp.lt.s32.totalorder %s1904_s24, %s1904_s24 }
 0xe31   : > { %p2375_p7 = scmp.ne.s32.totalorder %s1904_s24, %s2374_s22  ;;  %p2382_p11 = scmp.lt.s32.totalorder %s2374_s22, %s2374_s22 }
 0xe33   : > { %p2376_p8 = pnand %p2375_p7, %p2273_p6  ;;  %p2383_p12 = por %p2382_p11, %p2381_p10 }
 0xe35   : > { %p2377_p9 = pneg %p2376_p8 }
 0xe37   : > { %p2384_p13 = pnand %p2383_p12, %p2377_p9 }
 0xe39   : > { %2387 = shalt.err (!%p2384_p13)
}
 0xe3a   : > { %s2915_s30 = sld [smem:[#allocation16_spill]] }
 0xe40   : > { %s2388_s7 = scalar_lea.hbm %s2915_s30, 256 }
 0xe41   : > { %p2389_p0 = scmp.ne.s32.totalorder %s2915_s30, %s2388_s7  ;;  %p2394_p3 = scmp.lt.u32.totalorder %s2388_s7, %s2915_s30 }
 0xe43   : > { %p2390_p1 = pnand %p2389_p0, %p2273_p6 }
 0xe45   : > { %p2391_p2 = pneg %p2390_p1 }
 0xe47   : > { %p2396_p4 = pnand %p2394_p3, %p2391_p2 }
 0xe49   : > { %2399 = shalt.err (!%p2396_p4)
}
 0xe4a   : > { %s2432_s26 = smov 128  }
 0xe4b   : > { %2270 = dma.vmem_to_hbm [thread:$0]  (%p2273_p6), %s1904_s24, 256, %s2915_s30, [#allocation5], %s2432_s26, %s2432_s26, %s2425_s8  }
 0xe4c   : > { %2405 = dma.done.wait (%p2273_p6), [#allocation5], 256  }
 0xe4d   : > { %2407 = vsyncadd (%p2273_p6), [#allocation5], 4294967040 }
 0xe4e PF: > { %s2916_s17 = sld [smem:[#allocation7_spill]] }
 0xe54   : > { %s29_s27 = sadd.s32 1, %s2916_s17  }
 0xe55   : > { %p26_p5 = scmp.ge.s32.totalorder %s29_s27, 4  }
 0xe57   :  { %28 = sbr.rel (!%p26_p5) target bundleno = 11 (0xb), region = 157 }
 0xe5e   :  { %1919 = vsyncpa [#allocation5], 1 }
 0xe5f   :  { %1921 = vsyncpa [#allocation5 + $0x1], 1 }

</bundles_post_ra>
